<compile_context>
chip_gen: v5e
topology: v5e:2x2
jax: 0.10.0
libtpu: 0.0.40
codegen_flags: <defaults>
</compile_context>

<pallas_src>
import functools

import jax
import jax.numpy as jnp
from jax import lax
from jax.experimental import pallas as pl
from jax.experimental.pallas import tpu as pltpu

NUM_GROUPS = 32
EPS = 1e-5


# --------------------------- pass 1: GroupNorm statistics ---------------------------
def _gn_stats_kernel(x_ref, sum_ref, sq_ref):
    t = pl.program_id(1)
    x = x_ref[...]                                   # (TH, W, C) f32 row tile
    x = x.reshape(-1, x.shape[-1]).astype(jnp.float32)
    s = jnp.sum(x, axis=0, keepdims=True)            # (1, C)
    ss = jnp.sum(x * x, axis=0, keepdims=True)       # (1, C)

    @pl.when(t == 0)
    def _():
        sum_ref[...] = jnp.zeros_like(sum_ref)
        sq_ref[...] = jnp.zeros_like(sq_ref)

    sum_ref[...] += s
    sq_ref[...] += ss


# ------------------- pass 2: normalize + SiLU + 3x3 stride-2 conv -------------------
def _gn_silu_conv_kernel(xe_ref, xo_ref, xh_ref, scale_ref, shift_ref,
                         wa_ref, w0_ref, b_ref, o_ref, *, C, CO):
    # xe_ref: even input rows (2i)   of the tile, shape (TH_O, WO, 2C)  [lane = W-pair]
    # xo_ref: odd  input rows (2i+1) of the tile, shape (TH_O, WO, 2C)
    # xh_ref: single halo input row (t*TH - 1),   shape (1,    WO, 2C)
    TH_O, WO, _ = xe_ref.shape
    t = pl.program_id(1)

    scale = scale_ref[...]                           # (1, 2C) f32 (gamma * rstd, tiled x2)
    shift = shift_ref[...]                           # (1, 2C) f32 (beta - mean*scale)
    col0 = lax.broadcasted_iota(jnp.int32, (1, WO, 1), 1) == 0

    def prep(v):
        """GroupNorm affine + SiLU for one row set.

        Returns (z, s): z[r, j, :C] = act(y[r, 2j]), z[r, j, C:] = act(y[r, 2j+1]) in bf16,
        and s[r, j, :] = act(y[r, 2j-1]) (zero at j == 0) for the kw=0 taps.
        """
        y = v.astype(jnp.float32) * scale + shift
        y = y * jax.nn.sigmoid(y)                    # SiLU (f32)
        s = pltpu.roll(y[..., C:], shift=1, axis=1)  # odd columns shifted right along WO
        s = jnp.where(col0, jnp.zeros_like(s), s)    # left zero-pad column
        return y.astype(jnp.bfloat16), s.astype(jnp.bfloat16)

    ze, se = prep(xe_ref[...])                       # kernel row kh=1 (input row 2i)
    zo, so = prep(xo_ref[...])                       # kernel row kh=2 (input row 2i+1)
    zh, sh = prep(xh_ref[...])                       # halo row (input row t*TH - 1)
    zh = jnp.where(t == 0, jnp.zeros_like(zh), zh)   # top zero-pad row of the image
    sh = jnp.where(t == 0, jnp.zeros_like(sh), sh)

    if TH_O > 1:                                     # kernel row kh=0 (input row 2i-1)
        zom = jnp.concatenate([zh, zo[:TH_O - 1]], axis=0)
        som = jnp.concatenate([sh, so[:TH_O - 1]], axis=0)
    else:
        zom, som = zh, sh

    M = TH_O * WO
    f32 = jnp.float32
    # wa[kh] = [w[kh,1]; w[kh,2]] (2C, CO) -> kw=1 and kw=2 taps in one K=2C matmul.
    # w0[kh] =  w[kh,0]           (C,  CO) -> kw=0 tap on the shifted odd columns.
    acc = jnp.dot(zom.reshape(M, 2 * C), wa_ref[0], preferred_element_type=f32)
    acc += jnp.dot(som.reshape(M, C), w0_ref[0], preferred_element_type=f32)
    acc += jnp.dot(ze.reshape(M, 2 * C), wa_ref[1], preferred_element_type=f32)
    acc += jnp.dot(se.reshape(M, C), w0_ref[1], preferred_element_type=f32)
    acc += jnp.dot(zo.reshape(M, 2 * C), wa_ref[2], preferred_element_type=f32)
    acc += jnp.dot(so.reshape(M, C), w0_ref[2], preferred_element_type=f32)

    acc += b_ref[...].astype(f32)                    # (1, CO) broadcast
    o_ref[...] = acc.reshape(TH_O, WO, CO).astype(o_ref.dtype)


def _pick_row_tile(HO, WO, C):
    """Largest output-row tile (divisor of HO) whose f32 input slab fits a small VMEM
    budget, preferring >=2 tiles so the spatial grid axis can feed both v7x cores."""
    row_bytes = 2 * WO * 2 * C * 4                   # one output row <-> two input rows
    budget = 2 * 1024 * 1024
    divs = [d for d in range(1, HO + 1) if HO % d == 0]
    fitting = [d for d in divs if d * row_bytes <= budget] or [1]
    best = max(fitting)
    if best == HO and HO >= 4:
        smaller = [d for d in fitting if d < HO]
        if smaller:
            best = max(smaller)
    return best


def downsample_forward(x_nchw, params):
    gamma, beta = params["gamma"], params["beta"]
    w_oihw, bias = params["w"], params["b"]
    N, C, H, W = x_nchw.shape
    CO = w_oihw.shape[0]
    assert C % NUM_GROUPS == 0, "GroupNorm(32) requires C % 32 == 0"
    assert H % 2 == 0 and W % 2 == 0
    HO, WO = H // 2, W // 2
    cg = C // NUM_GROUPS

    TH_O = _pick_row_tile(HO, WO, C)                 # output rows per tile
    T = HO // TH_O
    TH = 2 * TH_O                                    # input rows per tile

    x = jnp.transpose(x_nchw, (0, 2, 3, 1))          # NHWC, f32
    # Free space-to-depth view: x5[n, h2, hp, w2, wp*C + c] = x[n, 2*h2+hp, 2*w2+wp, c]
    x5 = x.reshape(N, HO, 2, WO, 2 * C)

    # ----------------------------- pass 1: statistics -----------------------------
    sums, sqs = pl.pallas_call(
        _gn_stats_kernel,
        out_shape=(jax.ShapeDtypeStruct((N, 1, C), jnp.float32),
                   jax.ShapeDtypeStruct((N, 1, C), jnp.float32)),
        grid=(N, T),
        in_specs=[pl.BlockSpec((None, TH, W, C), lambda n, t: (n, t, 0, 0))],
        out_specs=(pl.BlockSpec((None, 1, C), lambda n, t: (n, 0, 0)),
                   pl.BlockSpec((None, 1, C), lambda n, t: (n, 0, 0))),
        compiler_params=pltpu.CompilerParams(
            dimension_semantics=("parallel", "arbitrary")),
    )(x)

    # Fold GroupNorm (biased variance, matches torch) + affine into per-(n,c) scale/shift.
    cnt = float(cg * H * W)
    gsum = sums.reshape(N, NUM_GROUPS, cg).sum(-1)
    gsq = sqs.reshape(N, NUM_GROUPS, cg).sum(-1)
    mean = gsum / cnt
    var = gsq / cnt - mean * mean
    rstd = lax.rsqrt(var + EPS)
    scale_c = gamma[None, :] * jnp.repeat(rstd, cg, axis=1)          # (N, C)
    shift_c = beta[None, :] - jnp.repeat(mean, cg, axis=1) * scale_c  # (N, C)
    scale2 = jnp.concatenate([scale_c, scale_c], axis=-1).reshape(N, 1, 2 * C)
    shift2 = jnp.concatenate([shift_c, shift_c], axis=-1).reshape(N, 1, 2 * C)

    # Weights packed for the fused-tap matmuls (bf16 MXU operands).
    w_hwio = jnp.transpose(w_oihw, (2, 3, 1, 0))                      # (3, 3, C, CO)
    wa = jnp.concatenate([w_hwio[:, 1], w_hwio[:, 2]], axis=1).astype(jnp.bfloat16)
    w0 = w_hwio[:, 0].astype(jnp.bfloat16)                            # (3, C, CO)
    b2 = bias.reshape(1, CO).astype(jnp.float32)

    # --------------------- pass 2: normalize + SiLU + conv ------------------------
    row_spec = lambda n, t: (n, t, 0, 0, 0)                           # even input rows
    out_nhwc = pl.pallas_call(
        functools.partial(_gn_silu_conv_kernel, C=C, CO=CO),
        out_shape=jax.ShapeDtypeStruct((N, HO, WO, CO), jnp.float32),
        grid=(N, T),
        in_specs=[
            pl.BlockSpec((None, TH_O, None, WO, 2 * C), row_spec),                   # even rows
            pl.BlockSpec((None, TH_O, None, WO, 2 * C), lambda n, t: (n, t, 1, 0, 0)),  # odd rows
            pl.BlockSpec((None, 1, None, WO, 2 * C),                                 # halo row
                         lambda n, t: (n, jnp.maximum(t * TH_O - 1, 0), 1, 0, 0)),
            pl.BlockSpec((None, 1, 2 * C), lambda n, t: (n, 0, 0)),                  # scale
            pl.BlockSpec((None, 1, 2 * C), lambda n, t: (n, 0, 0)),                  # shift
            pl.BlockSpec((3, 2 * C, CO), lambda n, t: (0, 0, 0)),                    # wa
            pl.BlockSpec((3, C, CO), lambda n, t: (0, 0, 0)),                        # w0
            pl.BlockSpec((1, CO), lambda n, t: (0, 0)),                              # bias
        ],
        out_specs=pl.BlockSpec((None, TH_O, WO, CO), lambda n, t: (n, t, 0, 0)),
        compiler_params=pltpu.CompilerParams(
            dimension_semantics=("parallel", "parallel")),
    )(x5, x5, x5, scale2, shift2, wa, w0, b2)

    return jnp.transpose(out_nhwc, (0, 3, 1, 2))                      # back to NCHW


# ------------------------------- pure-JAX reference --------------------------------
def reference(x_nchw, params):
    gamma, beta, w, b = params["gamma"], params["beta"], params["w"], params["b"]
    N, C, H, W = x_nchw.shape
    cg = C // NUM_GROUPS
    xr = x_nchw.reshape(N, NUM_GROUPS, cg, H, W)
    mean = xr.mean(axis=(2, 3, 4), keepdims=True)
    var = xr.var(axis=(2, 3, 4), keepdims=True)
    xn = ((xr - mean) / jnp.sqrt(var + EPS)).reshape(N, C, H, W)
    xn = xn * gamma[None, :, None, None] + beta[None, :, None, None]
    a = xn * jax.nn.sigmoid(xn)
    out = lax.conv_general_dilated(
        a, w, window_strides=(2, 2), padding=((1, 1), (1, 1)),
        dimension_numbers=("NCHW", "OIHW", "NCHW"),
    )
    return out + b[None, :, None, None]


if __name__ == "__main__":
    N, CIN, COUT, H, W = 2, 64, 32, 16, 16
    key = jax.random.PRNGKey(0)
    k1, k2, k3, k4, k5 = jax.random.split(key, 5)
    x = jax.random.normal(k1, (N, CIN, H, W), jnp.float32)
    params = {
        "gamma": 1.0 + 0.1 * jax.random.normal(k2, (CIN,), jnp.float32),
        "beta": 0.1 * jax.random.normal(k3, (CIN,), jnp.float32),
        "w": 0.1 * jax.random.normal(k4, (COUT, CIN, 3, 3), jnp.float32),
        "b": 0.1 * jax.random.normal(k5, (COUT,), jnp.float32),
    }

    out = jax.block_until_ready(jax.jit(downsample_forward)(x, params))
    assert out.shape == (N, COUT, H // 2, W // 2), out.shape

    ref = reference(x, params)
    err = float(jnp.max(jnp.abs(out - ref)))
    # bf16 MXU operands (f32 accumulation) -> tolerance looser than pure-f32.
    assert jnp.allclose(out, ref, atol=5e-2, rtol=5e-2), f"max abs err {err}"

    print("KERNEL_OK")
</pallas_src>

<mosaic_0001>
module attributes {stable_mosaic.version = 11 : i64} {
  func.func @_gn_stats_kernel(%arg0: i32, %arg1: i32, %arg2: memref<1x8x16x64xf32, #tpu.memory_space<vmem>>, %arg3: memref<1x1x64xf32, #tpu.memory_space<vmem>>, %arg4: memref<1x1x64xf32, #tpu.memory_space<vmem>>) attributes {dimension_semantics = [#tpu.dimension_semantics<parallel>, #tpu.dimension_semantics<arbitrary>], iteration_bounds = array<i64: 2, 2>, scalar_prefetch = 0 : i64, scratch_operands = 0 : i64, tpu.core_type = #tpu.core_type<tc>, window_params = [{transform_indices = @transform_0, window_bounds = array<i64: 1, 8, 16, 64>}, {transform_indices = @transform_1, window_bounds = array<i64: 1, 1, 64>}, {transform_indices = @transform_2, window_bounds = array<i64: 1, 1, 64>}]} {
    %c0 = arith.constant 0 : index
    %c0_0 = arith.constant 0 : index
    %c0_1 = arith.constant 0 : index
    %c0_2 = arith.constant 0 : index
    %0 = vector.load %arg2[%c0, %c0_0, %c0_1, %c0_2] : memref<1x8x16x64xf32, #tpu.memory_space<vmem>>, vector<1x8x16x64xf32>
    %1 = vector.shape_cast %0 : vector<1x8x16x64xf32> to vector<8x16x64xf32>
    %2 = vector.shape_cast %1 : vector<8x16x64xf32> to vector<128x64xf32>
    %cst = arith.constant dense<0.000000e+00> : vector<64xf32>
    %3 = vector.multi_reduction <add>, %2, %cst [0] : vector<128x64xf32> to vector<64xf32>
    %4 = vector.shape_cast %3 : vector<64xf32> to vector<1x64xf32>
    %5 = arith.mulf %2, %2 : vector<128x64xf32>
    %cst_3 = arith.constant dense<0.000000e+00> : vector<64xf32>
    %6 = vector.multi_reduction <add>, %5, %cst_3 [0] : vector<128x64xf32> to vector<64xf32>
    %7 = vector.shape_cast %6 : vector<64xf32> to vector<1x64xf32>
    %c0_i32 = arith.constant 0 : i32
    %8 = arith.cmpi eq, %arg1, %c0_i32 : i32
    %9 = arith.extui %8 : i1 to i32
    %c0_i32_4 = arith.constant 0 : i32
    %10 = arith.cmpi ne, %9, %c0_i32_4 : i32
    scf.if %10 {
      %cst_17 = arith.constant 0.000000e+00 : f32
      %23 = vector.broadcast %cst_17 : f32 to vector<1x64xf32>
      %c0_18 = arith.constant 0 : index
      %c0_19 = arith.constant 0 : index
      %c0_20 = arith.constant 0 : index
      %24 = vector.load %arg3[%c0_18, %c0_19, %c0_20] : memref<1x1x64xf32, #tpu.memory_space<vmem>>, vector<1x1x64xf32>
      %25 = vector.shape_cast %24 : vector<1x1x64xf32> to vector<1x64xf32>
      %26 = vector.shape_cast %23 : vector<1x64xf32> to vector<1x1x64xf32>
      tpu.vector_store %arg3[%c0_18, %c0_19, %c0_20], %26 {strides = array<i32>} : memref<1x1x64xf32, #tpu.memory_space<vmem>>, vector<1x1x64xf32>,
      %cst_21 = arith.constant 0.000000e+00 : f32
      %27 = vector.broadcast %cst_21 : f32 to vector<1x64xf32>
      %c0_22 = arith.constant 0 : index
      %c0_23 = arith.constant 0 : index
      %c0_24 = arith.constant 0 : index
      %28 = vector.load %arg4[%c0_22, %c0_23, %c0_24] : memref<1x1x64xf32, #tpu.memory_space<vmem>>, vector<1x1x64xf32>
      %29 = vector.shape_cast %28 : vector<1x1x64xf32> to vector<1x64xf32>
      %30 = vector.shape_cast %27 : vector<1x64xf32> to vector<1x1x64xf32>
      tpu.vector_store %arg4[%c0_22, %c0_23, %c0_24], %30 {strides = array<i32>} : memref<1x1x64xf32, #tpu.memory_space<vmem>>, vector<1x1x64xf32>,
    } else {
    }
    %c0_5 = arith.constant 0 : index
    %c0_6 = arith.constant 0 : index
    %c0_7 = arith.constant 0 : index
    %11 = vector.load %arg3[%c0_5, %c0_6, %c0_7] : memref<1x1x64xf32, #tpu.memory_space<vmem>>, vector<1x1x64xf32>
    %12 = vector.shape_cast %11 : vector<1x1x64xf32> to vector<1x64xf32>
    %13 = arith.addf %12, %4 : vector<1x64xf32>
    %c0_8 = arith.constant 0 : index
    %c0_9 = arith.constant 0 : index
    %c0_10 = arith.constant 0 : index
    %14 = vector.load %arg3[%c0_8, %c0_9, %c0_10] : memref<1x1x64xf32, #tpu.memory_space<vmem>>, vector<1x1x64xf32>
    %15 = vector.shape_cast %14 : vector<1x1x64xf32> to vector<1x64xf32>
    %16 = vector.shape_cast %13 : vector<1x64xf32> to vector<1x1x64xf32>
    tpu.vector_store %arg3[%c0_8, %c0_9, %c0_10], %16 {strides = array<i32>} : memref<1x1x64xf32, #tpu.memory_space<vmem>>, vector<1x1x64xf32>,
    %c0_11 = arith.constant 0 : index
    %c0_12 = arith.constant 0 : index
    %c0_13 = arith.constant 0 : index
    %17 = vector.load %arg4[%c0_11, %c0_12, %c0_13] : memref<1x1x64xf32, #tpu.memory_space<vmem>>, vector<1x1x64xf32>
    %18 = vector.shape_cast %17 : vector<1x1x64xf32> to vector<1x64xf32>
    %19 = arith.addf %18, %7 : vector<1x64xf32>
    %c0_14 = arith.constant 0 : index
    %c0_15 = arith.constant 0 : index
    %c0_16 = arith.constant 0 : index
    %20 = vector.load %arg4[%c0_14, %c0_15, %c0_16] : memref<1x1x64xf32, #tpu.memory_space<vmem>>, vector<1x1x64xf32>
    %21 = vector.shape_cast %20 : vector<1x1x64xf32> to vector<1x64xf32>
    %22 = vector.shape_cast %19 : vector<1x64xf32> to vector<1x1x64xf32>
    tpu.vector_store %arg4[%c0_14, %c0_15, %c0_16], %22 {strides = array<i32>} : memref<1x1x64xf32, #tpu.memory_space<vmem>>, vector<1x1x64xf32>,
    return
  }
  func.func @transform_0(%arg0: i32, %arg1: i32) -> (i32, i32, i32, i32) {
    %c0_i32 = arith.constant 0 : i32
    %c0_i32_0 = arith.constant 0 : i32
    %c0_i32_1 = arith.constant 0 : i32
    return %arg0, %arg1, %c0_i32, %c0_i32_0 : i32, i32, i32, i32
  }
  func.func @transform_1(%arg0: i32, %arg1: i32) -> (i32, i32, i32) {
    %c0_i32 = arith.constant 0 : i32
    %c0_i32_0 = arith.constant 0 : i32
    %c0_i32_1 = arith.constant 0 : i32
    return %arg0, %c0_i32, %c0_i32_0 : i32, i32, i32
  }
  func.func @transform_2(%arg0: i32, %arg1: i32) -> (i32, i32, i32) {
    %c0_i32 = arith.constant 0 : i32
    %c0_i32_0 = arith.constant 0 : i32
    %c0_i32_1 = arith.constant 0 : i32
    return %arg0, %c0_i32, %c0_i32_0 : i32, i32, i32
  }
}

module attributes {stable_mosaic.version = 11 : i64} {
  func.func @_gn_silu_conv_kernel(%arg0: i32, %arg1: i32, %arg2: memref<1x4x1x8x128xf32, #tpu.memory_space<vmem>>, %arg3: memref<1x4x1x8x128xf32, #tpu.memory_space<vmem>>, %arg4: memref<1x1x1x8x128xf32, #tpu.memory_space<vmem>>, %arg5: memref<1x1x128xf32, #tpu.memory_space<vmem>>, %arg6: memref<1x1x128xf32, #tpu.memory_space<vmem>>, %arg7: memref<3x128x32xbf16, #tpu.memory_space<vmem>>, %arg8: memref<3x64x32xbf16, #tpu.memory_space<vmem>>, %arg9: memref<1x32xf32, #tpu.memory_space<vmem>>, %arg10: memref<1x4x8x32xf32, #tpu.memory_space<vmem>>) attributes {dimension_semantics = [#tpu.dimension_semantics<parallel>, #tpu.dimension_semantics<parallel>], iteration_bounds = array<i64: 2, 2>, scalar_prefetch = 0 : i64, scratch_operands = 0 : i64, tpu.core_type = #tpu.core_type<tc>, window_params = [{transform_indices = @transform_0, window_bounds = array<i64: 1, 4, 1, 8, 128>}, {transform_indices = @transform_1, window_bounds = array<i64: 1, 4, 1, 8, 128>}, {transform_indices = @transform_2, window_bounds = array<i64: 1, 1, 1, 8, 128>}, {transform_indices = @transform_3, window_bounds = array<i64: 1, 1, 128>}, {transform_indices = @transform_4, window_bounds = array<i64: 1, 1, 128>}, {pipeline_mode = #tpu.pipeline_mode<synchronous>, transform_indices = @transform_5, window_bounds = array<i64: 3, 128, 32>}, {pipeline_mode = #tpu.pipeline_mode<synchronous>, transform_indices = @transform_6, window_bounds = array<i64: 3, 64, 32>}, {pipeline_mode = #tpu.pipeline_mode<synchronous>, transform_indices = @transform_7, window_bounds = array<i64: 1, 32>}, {transform_indices = @transform_8, window_bounds = array<i64: 1, 4, 8, 32>}]} {
    %c0 = arith.constant 0 : index
    %c0_0 = arith.constant 0 : index
    %c0_1 = arith.constant 0 : index
    %0 = vector.load %arg5[%c0, %c0_0, %c0_1] : memref<1x1x128xf32, #tpu.memory_space<vmem>>, vector<1x1x128xf32>
    %1 = vector.shape_cast %0 : vector<1x1x128xf32> to vector<1x128xf32>
    %c0_2 = arith.constant 0 : index
    %c0_3 = arith.constant 0 : index
    %c0_4 = arith.constant 0 : index
    %2 = vector.load %arg6[%c0_2, %c0_3, %c0_4] : memref<1x1x128xf32, #tpu.memory_space<vmem>>, vector<1x1x128xf32>
    %3 = vector.shape_cast %2 : vector<1x1x128xf32> to vector<1x128xf32>
    %4 = tpu.iota {dimensions = array<i32: 1>} : vector<1x8x1xi32>
    %c0_i32 = arith.constant 0 : i32
    %5 = vector.broadcast %c0_i32 : i32 to vector<1x8x1xi32>
    %6 = arith.cmpi eq, %4, %5 : vector<1x8x1xi32>
    %c0_5 = arith.constant 0 : index
    %c0_6 = arith.constant 0 : index
    %c0_7 = arith.constant 0 : index
    %c0_8 = arith.constant 0 : index
    %c0_9 = arith.constant 0 : index
    %7 = vector.load %arg2[%c0_5, %c0_6, %c0_7, %c0_8, %c0_9] : memref<1x4x1x8x128xf32, #tpu.memory_space<vmem>>, vector<1x4x1x8x128xf32>
    %8 = vector.shape_cast %7 : vector<1x4x1x8x128xf32> to vector<4x8x128xf32>
    %9 = vector.shape_cast %1 : vector<1x128xf32> to vector<1x1x128xf32>
    %10 = vector.broadcast %9 : vector<1x1x128xf32> to vector<4x8x128xf32>
    %11 = arith.mulf %8, %10 : vector<4x8x128xf32>
    %12 = vector.shape_cast %3 : vector<1x128xf32> to vector<1x1x128xf32>
    %13 = vector.broadcast %12 : vector<1x1x128xf32> to vector<4x8x128xf32>
    %14 = arith.addf %11, %13 : vector<4x8x128xf32>
    %15 = arith.negf %14 : vector<4x8x128xf32>
    %16 = math.exp %15 : vector<4x8x128xf32>
    %cst = arith.constant 1.000000e+00 : f32
    %17 = vector.broadcast %cst : f32 to vector<4x8x128xf32>
    %18 = arith.addf %17, %16 : vector<4x8x128xf32>
    %19 = arith.divf %17, %18 : vector<4x8x128xf32>
    %20 = arith.mulf %14, %19 : vector<4x8x128xf32>
    %21 = vector.extract_strided_slice %20 {offsets = [0, 0, 64], sizes = [4, 8, 64], strides = [1, 1, 1]} : vector<4x8x128xf32> to vector<4x8x64xf32>
    %c1_i32 = arith.constant 1 : i32
    %22 = tpu.dynamic_rotate %21 by %c1_i32 dim 1 : vector<4x8x64xf32>, i32 -> vector<4x8x64xf32>
    %cst_10 = arith.constant 0.000000e+00 : f32
    %23 = vector.broadcast %cst_10 : f32 to vector<4x8x64xf32>
    %24 = vector.shape_cast %6 : vector<1x8x1xi1> to vector<1x8x1xi1>
    %25 = vector.broadcast %24 : vector<1x8x1xi1> to vector<4x8x64xi1>
    %26 = arith.select %25, %23, %22 : vector<4x8x64xi1>, vector<4x8x64xf32>
    %27 = arith.truncf %20 : vector<4x8x128xf32> to vector<4x8x128xbf16>
    %28 = arith.truncf %26 : vector<4x8x64xf32> to vector<4x8x64xbf16>
    %c0_11 = arith.constant 0 : index
    %c0_12 = arith.constant 0 : index
    %c0_13 = arith.constant 0 : index
    %c0_14 = arith.constant 0 : index
    %c0_15 = arith.constant 0 : index
    %29 = vector.load %arg3[%c0_11, %c0_12, %c0_13, %c0_14, %c0_15] : memref<1x4x1x8x128xf32, #tpu.memory_space<vmem>>, vector<1x4x1x8x128xf32>
    %30 = vector.shape_cast %29 : vector<1x4x1x8x128xf32> to vector<4x8x128xf32>
    %31 = vector.shape_cast %1 : vector<1x128xf32> to vector<1x1x128xf32>
    %32 = vector.broadcast %31 : vector<1x1x128xf32> to vector<4x8x128xf32>
    %33 = arith.mulf %30, %32 : vector<4x8x128xf32>
    %34 = vector.shape_cast %3 : vector<1x128xf32> to vector<1x1x128xf32>
    %35 = vector.broadcast %34 : vector<1x1x128xf32> to vector<4x8x128xf32>
    %36 = arith.addf %33, %35 : vector<4x8x128xf32>
    %37 = arith.negf %36 : vector<4x8x128xf32>
    %38 = math.exp %37 : vector<4x8x128xf32>
    %cst_16 = arith.constant 1.000000e+00 : f32
    %39 = vector.broadcast %cst_16 : f32 to vector<4x8x128xf32>
    %40 = arith.addf %39, %38 : vector<4x8x128xf32>
    %41 = arith.divf %39, %40 : vector<4x8x128xf32>
    %42 = arith.mulf %36, %41 : vector<4x8x128xf32>
    %43 = vector.extract_strided_slice %42 {offsets = [0, 0, 64], sizes = [4, 8, 64], strides = [1, 1, 1]} : vector<4x8x128xf32> to vector<4x8x64xf32>
    %c1_i32_17 = arith.constant 1 : i32
    %44 = tpu.dynamic_rotate %43 by %c1_i32_17 dim 1 : vector<4x8x64xf32>, i32 -> vector<4x8x64xf32>
    %cst_18 = arith.constant 0.000000e+00 : f32
    %45 = vector.broadcast %cst_18 : f32 to vector<4x8x64xf32>
    %46 = vector.shape_cast %6 : vector<1x8x1xi1> to vector<1x8x1xi1>
    %47 = vector.broadcast %46 : vector<1x8x1xi1> to vector<4x8x64xi1>
    %48 = arith.select %47, %45, %44 : vector<4x8x64xi1>, vector<4x8x64xf32>
    %49 = arith.truncf %42 : vector<4x8x128xf32> to vector<4x8x128xbf16>
    %50 = arith.truncf %48 : vector<4x8x64xf32> to vector<4x8x64xbf16>
    %c0_19 = arith.constant 0 : index
    %c0_20 = arith.constant 0 : index
    %c0_21 = arith.constant 0 : index
    %c0_22 = arith.constant 0 : index
    %c0_23 = arith.constant 0 : index
    %51 = vector.load %arg4[%c0_19, %c0_20, %c0_21, %c0_22, %c0_23] : memref<1x1x1x8x128xf32, #tpu.memory_space<vmem>>, vector<1x1x1x8x128xf32>
    %52 = vector.shape_cast %51 : vector<1x1x1x8x128xf32> to vector<1x8x128xf32>
    %53 = vector.shape_cast %1 : vector<1x128xf32> to vector<1x1x128xf32>
    %54 = vector.broadcast %53 : vector<1x1x128xf32> to vector<1x8x128xf32>
    %55 = arith.mulf %52, %54 : vector<1x8x128xf32>
    %56 = vector.shape_cast %3 : vector<1x128xf32> to vector<1x1x128xf32>
    %57 = vector.broadcast %56 : vector<1x1x128xf32> to vector<1x8x128xf32>
    %58 = arith.addf %55, %57 : vector<1x8x128xf32>
    %59 = arith.negf %58 : vector<1x8x128xf32>
    %60 = math.exp %59 : vector<1x8x128xf32>
    %cst_24 = arith.constant 1.000000e+00 : f32
    %61 = vector.broadcast %cst_24 : f32 to vector<1x8x128xf32>
    %62 = arith.addf %61, %60 : vector<1x8x128xf32>
    %63 = arith.divf %61, %62 : vector<1x8x128xf32>
    %64 = arith.mulf %58, %63 : vector<1x8x128xf32>
    %65 = vector.extract_strided_slice %64 {offsets = [0, 0, 64], sizes = [1, 8, 64], strides = [1, 1, 1]} : vector<1x8x128xf32> to vector<1x8x64xf32>
    %c1_i32_25 = arith.constant 1 : i32
    %66 = tpu.dynamic_rotate %65 by %c1_i32_25 dim 1 : vector<1x8x64xf32>, i32 -> vector<1x8x64xf32>
    %cst_26 = arith.constant 0.000000e+00 : f32
    %67 = vector.broadcast %cst_26 : f32 to vector<1x8x64xf32>
    %68 = vector.shape_cast %6 : vector<1x8x1xi1> to vector<1x8x1xi1>
    %69 = vector.broadcast %68 : vector<1x8x1xi1> to vector<1x8x64xi1>
    %70 = arith.select %69, %67, %66 : vector<1x8x64xi1>, vector<1x8x64xf32>
    %71 = arith.truncf %64 : vector<1x8x128xf32> to vector<1x8x128xbf16>
    %72 = arith.truncf %70 : vector<1x8x64xf32> to vector<1x8x64xbf16>
    %c0_i32_27 = arith.constant 0 : i32
    %73 = arith.cmpi eq, %arg1, %c0_i32_27 : i32
    %cst_28 = arith.constant 0.000000e+00 : bf16
    %74 = vector.broadcast %cst_28 : bf16 to vector<1x8x128xbf16>
    %75 = arith.select %73, %74, %71 : vector<1x8x128xbf16>
    %c0_i32_29 = arith.constant 0 : i32
    %76 = arith.cmpi eq, %arg1, %c0_i32_29 : i32
    %cst_30 = arith.constant 0.000000e+00 : bf16
    %77 = vector.broadcast %cst_30 : bf16 to vector<1x8x64xbf16>
    %78 = arith.select %76, %77, %72 : vector<1x8x64xbf16>
    %79 = vector.extract_strided_slice %49 {offsets = [0, 0, 0], sizes = [3, 8, 128], strides = [1, 1, 1]} : vector<4x8x128xbf16> to vector<3x8x128xbf16>
    %80 = tpu.concatenate %75, %79 in 0 : vector<1x8x128xbf16>, vector<3x8x128xbf16> -> vector<4x8x128xbf16>
    %81 = vector.extract_strided_slice %50 {offsets = [0, 0, 0], sizes = [3, 8, 64], strides = [1, 1, 1]} : vector<4x8x64xbf16> to vector<3x8x64xbf16>
    %82 = tpu.concatenate %78, %81 in 0 : vector<1x8x64xbf16>, vector<3x8x64xbf16> -> vector<4x8x64xbf16>
    %83 = vector.shape_cast %80 : vector<4x8x128xbf16> to vector<32x128xbf16>
    %c0_31 = arith.constant 0 : index
    %c0_32 = arith.constant 0 : index
    %c0_33 = arith.constant 0 : index
    %84 = vector.load %arg7[%c0_31, %c0_32, %c0_33] : memref<3x128x32xbf16, #tpu.memory_space<vmem>>, vector<1x128x32xbf16>
    %85 = vector.shape_cast %84 : vector<1x128x32xbf16> to vector<128x32xbf16>
    %cst_34 = arith.constant dense<0.000000e+00> : vector<32x32xf32>
    %86 = tpu.matmul %83, %85, %cst_34 {dimension_numbers = #tpu.dot_dimension_numbers<[1], [0], [0], [1], [0, 0, 1, 1], [], []>} : vector<32x128xbf16>, vector<128x32xbf16>, vector<32x32xf32> -> vector<32x32xf32>
    %87 = vector.shape_cast %82 : vector<4x8x64xbf16> to vector<32x64xbf16>
    %c0_35 = arith.constant 0 : index
    %c0_36 = arith.constant 0 : index
    %c0_37 = arith.constant 0 : index
    %88 = vector.load %arg8[%c0_35, %c0_36, %c0_37] : memref<3x64x32xbf16, #tpu.memory_space<vmem>>, vector<1x64x32xbf16>
    %89 = vector.shape_cast %88 : vector<1x64x32xbf16> to vector<64x32xbf16>
    %cst_38 = arith.constant dense<0.000000e+00> : vector<32x32xf32>
    %90 = tpu.matmul %87, %89, %cst_38 {dimension_numbers = #tpu.dot_dimension_numbers<[1], [0], [0], [1], [0, 0, 1, 1], [], []>} : vector<32x64xbf16>, vector<64x32xbf16>, vector<32x32xf32> -> vector<32x32xf32>
    %91 = arith.addf %86, %90 : vector<32x32xf32>
    %92 = vector.shape_cast %27 : vector<4x8x128xbf16> to vector<32x128xbf16>
    %c1 = arith.constant 1 : index
    %c0_39 = arith.constant 0 : index
    %c0_40 = arith.constant 0 : index
    %93 = vector.load %arg7[%c1, %c0_39, %c0_40] : memref<3x128x32xbf16, #tpu.memory_space<vmem>>, vector<1x128x32xbf16>
    %94 = vector.shape_cast %93 : vector<1x128x32xbf16> to vector<128x32xbf16>
    %cst_41 = arith.constant dense<0.000000e+00> : vector<32x32xf32>
    %95 = tpu.matmul %92, %94, %cst_41 {dimension_numbers = #tpu.dot_dimension_numbers<[1], [0], [0], [1], [0, 0, 1, 1], [], []>} : vector<32x128xbf16>, vector<128x32xbf16>, vector<32x32xf32> -> vector<32x32xf32>
    %96 = arith.addf %91, %95 : vector<32x32xf32>
    %97 = vector.shape_cast %28 : vector<4x8x64xbf16> to vector<32x64xbf16>
    %c1_42 = arith.constant 1 : index
    %c0_43 = arith.constant 0 : index
    %c0_44 = arith.constant 0 : index
    %98 = vector.load %arg8[%c1_42, %c0_43, %c0_44] : memref<3x64x32xbf16, #tpu.memory_space<vmem>>, vector<1x64x32xbf16>
    %99 = vector.shape_cast %98 : vector<1x64x32xbf16> to vector<64x32xbf16>
    %cst_45 = arith.constant dense<0.000000e+00> : vector<32x32xf32>
    %100 = tpu.matmul %97, %99, %cst_45 {dimension_numbers = #tpu.dot_dimension_numbers<[1], [0], [0], [1], [0, 0, 1, 1], [], []>} : vector<32x64xbf16>, vector<64x32xbf16>, vector<32x32xf32> -> vector<32x32xf32>
    %101 = arith.addf %96, %100 : vector<32x32xf32>
    %102 = vector.shape_cast %49 : vector<4x8x128xbf16> to vector<32x128xbf16>
    %c2 = arith.constant 2 : index
    %c0_46 = arith.constant 0 : index
    %c0_47 = arith.constant 0 : index
    %103 = vector.load %arg7[%c2, %c0_46, %c0_47] : memref<3x128x32xbf16, #tpu.memory_space<vmem>>, vector<1x128x32xbf16>
    %104 = vector.shape_cast %103 : vector<1x128x32xbf16> to vector<128x32xbf16>
    %cst_48 = arith.constant dense<0.000000e+00> : vector<32x32xf32>
    %105 = tpu.matmul %102, %104, %cst_48 {dimension_numbers = #tpu.dot_dimension_numbers<[1], [0], [0], [1], [0, 0, 1, 1], [], []>} : vector<32x128xbf16>, vector<128x32xbf16>, vector<32x32xf32> -> vector<32x32xf32>
    %106 = arith.addf %101, %105 : vector<32x32xf32>
    %107 = vector.shape_cast %50 : vector<4x8x64xbf16> to vector<32x64xbf16>
    %c2_49 = arith.constant 2 : index
    %c0_50 = arith.constant 0 : index
    %c0_51 = arith.constant 0 : index
    %108 = vector.load %arg8[%c2_49, %c0_50, %c0_51] : memref<3x64x32xbf16, #tpu.memory_space<vmem>>, vector<1x64x32xbf16>
    %109 = vector.shape_cast %108 : vector<1x64x32xbf16> to vector<64x32xbf16>
    %cst_52 = arith.constant dense<0.000000e+00> : vector<32x32xf32>
    %110 = tpu.matmul %107, %109, %cst_52 {dimension_numbers = #tpu.dot_dimension_numbers<[1], [0], [0], [1], [0, 0, 1, 1], [], []>} : vector<32x64xbf16>, vector<64x32xbf16>, vector<32x32xf32> -> vector<32x32xf32>
    %111 = arith.addf %106, %110 : vector<32x32xf32>
    %c0_53 = arith.constant 0 : index
    %c0_54 = arith.constant 0 : index
    %112 = vector.load %arg9[%c0_53, %c0_54] : memref<1x32xf32, #tpu.memory_space<vmem>>, vector<1x32xf32>
    %113 = vector.broadcast %112 : vector<1x32xf32> to vector<32x32xf32>
    %114 = arith.addf %111, %113 : vector<32x32xf32>
    %115 = vector.shape_cast %114 : vector<32x32xf32> to vector<4x8x32xf32>
    %c0_55 = arith.constant 0 : index
    %c0_56 = arith.constant 0 : index
    %c0_57 = arith.constant 0 : index
    %c0_58 = arith.constant 0 : index
    %116 = vector.load %arg10[%c0_55, %c0_56, %c0_57, %c0_58] : memref<1x4x8x32xf32, #tpu.memory_space<vmem>>, vector<1x4x8x32xf32>
    %117 = vector.shape_cast %116 : vector<1x4x8x32xf32> to vector<4x8x32xf32>
    %118 = vector.shape_cast %115 : vector<4x8x32xf32> to vector<1x4x8x32xf32>
    tpu.vector_store %arg10[%c0_55, %c0_56, %c0_57, %c0_58], %118 {strides = array<i32>} : memref<1x4x8x32xf32, #tpu.memory_space<vmem>>, vector<1x4x8x32xf32>,
    return
  }
  func.func @transform_0(%arg0: i32, %arg1: i32) -> (i32, i32, i32, i32, i32) {
    %c0_i32 = arith.constant 0 : i32
    %c0_i32_0 = arith.constant 0 : i32
    %c0_i32_1 = arith.constant 0 : i32
    %c0_i32_2 = arith.constant 0 : i32
    return %arg0, %arg1, %c0_i32, %c0_i32_0, %c0_i32_1 : i32, i32, i32, i32, i32
  }
  func.func @transform_1(%arg0: i32, %arg1: i32) -> (i32, i32, i32, i32, i32) {
    %c1_i32 = arith.constant 1 : i32
    %c0_i32 = arith.constant 0 : i32
    %c0_i32_0 = arith.constant 0 : i32
    %c0_i32_1 = arith.constant 0 : i32
    return %arg0, %arg1, %c1_i32, %c0_i32, %c0_i32_0 : i32, i32, i32, i32, i32
  }
  func.func @transform_2(%arg0: i32, %arg1: i32) -> (i32, i32, i32, i32, i32) {
    %c4_i32 = arith.constant 4 : i32
    %0 = arith.muli %arg1, %c4_i32 : i32
    %c1_i32 = arith.constant 1 : i32
    %1 = arith.subi %0, %c1_i32 : i32
    %c0_i32 = arith.constant 0 : i32
    %2 = arith.maxsi %1, %c0_i32 : i32
    %c1_i32_0 = arith.constant 1 : i32
    %c0_i32_1 = arith.constant 0 : i32
    %c0_i32_2 = arith.constant 0 : i32
    %c0_i32_3 = arith.constant 0 : i32
    return %arg0, %2, %c1_i32_0, %c0_i32_1, %c0_i32_2 : i32, i32, i32, i32, i32
  }
  func.func @transform_3(%arg0: i32, %arg1: i32) -> (i32, i32, i32) {
    %c0_i32 = arith.constant 0 : i32
    %c0_i32_0 = arith.constant 0 : i32
    %c0_i32_1 = arith.constant 0 : i32
    return %arg0, %c0_i32, %c0_i32_0 : i32, i32, i32
  }
  func.func @transform_4(%arg0: i32, %arg1: i32) -> (i32, i32, i32) {
    %c0_i32 = arith.constant 0 : i32
    %c0_i32_0 = arith.constant 0 : i32
    %c0_i32_1 = arith.constant 0 : i32
    return %arg0, %c0_i32, %c0_i32_0 : i32, i32, i32
  }
  func.func @transform_5(%arg0: i32, %arg1: i32) -> (i32, i32, i32) {
    %c0_i32 = arith.constant 0 : i32
    %c0_i32_0 = arith.constant 0 : i32
    %c0_i32_1 = arith.constant 0 : i32
    %c0_i32_2 = arith.constant 0 : i32
    return %c0_i32, %c0_i32_0, %c0_i32_1 : i32, i32, i32
  }
  func.func @transform_6(%arg0: i32, %arg1: i32) -> (i32, i32, i32) {
    %c0_i32 = arith.constant 0 : i32
    %c0_i32_0 = arith.constant 0 : i32
    %c0_i32_1 = arith.constant 0 : i32
    %c0_i32_2 = arith.constant 0 : i32
    return %c0_i32, %c0_i32_0, %c0_i32_1 : i32, i32, i32
  }
  func.func @transform_7(%arg0: i32, %arg1: i32) -> (i32, i32) {
    %c0_i32 = arith.constant 0 : i32
    %c0_i32_0 = arith.constant 0 : i32
    %c0_i32_1 = arith.constant 0 : i32
    return %c0_i32, %c0_i32_0 : i32, i32
  }
  func.func @transform_8(%arg0: i32, %arg1: i32) -> (i32, i32, i32, i32) {
    %c0_i32 = arith.constant 0 : i32
    %c0_i32_0 = arith.constant 0 : i32
    %c0_i32_1 = arith.constant 0 : i32
    return %arg0, %arg1, %c0_i32, %c0_i32_0 : i32, i32, i32, i32
  }
}

</mosaic_0001>

<bundles_post_ra>
// kernel: downsample_forward.2
= control target key start
LH: loop header
LB: loop body
LE: loop exit
PB: predicated region body
PF: predicated region fallthrough
CT: control target
= control target key end

     0   :  { %8 = vsyncpa [#allocation3], 0  ;;  %s790_s0 = inlined_call_operand.hbm [shape: f32[2,16,16,64], index: 0, kind: input, shape index: {}]   ;;  %s791_s1 = inlined_call_operand.vmem [shape: f32[2,1,64], index: 1, kind: output, shape index: {0}]   ;;  %s792_s2 = inlined_call_operand.vmem [shape: f32[2,1,64], index: 2, kind: output, shape index: {1}]  }
   0x1   :  { %10 = vsyncpa [#allocation3 + $0x1], 0  ;;  %s613_s9 = smov 0   ;;  %s615_s10 = smov 0  }
   0x2   :  { %s617_s11 = smov 0   ;;  %s619_s12 = smov 0  }
   0x3   :  { %s621_s13 = smov 0   ;;  %s623_s14 = smov 0  }
   0x4   :  { %s625_s15 = smov 0   ;;  %s627_s16 = smov 0  }
   0x5 LB: > { %s408_s17 = sadd.s32 4294967295, %s593_s16   ;;  %s25_s18 = sadd.s32 1, %s585_s14  ;;  %s593_s16 = sphi %s627_s16, %s16_s16   ;;  %s589_s15 = sphi %s625_s15, %s801_s15   ;;  %s585_s14 = sphi %s623_s14, %s800_s14   ;;  %s581_s13 = sphi %s621_s13, %s799_s13   ;;  %s577_s12 = sphi %s619_s12, %s798_s12   ;;  %s573_s11 = sphi %s617_s11, %s797_s11   ;;  %s569_s10 = sphi %s615_s10, %s796_s10   ;;  %s565_s9 = sphi %s613_s9, %s795_s9  }
   0x6   : > { %p26_p0 = scmp.ge.s32.totalorder %s25_s18, 2  ;;  %s28_s19 = sadd.s32 1, %s589_s15 }
   0x7   : > { %s37_s20 = sadd.s32 1, %s573_s11  ;;  %p44_p1 = scmp.ne.s32.totalorder %s573_s11, %s569_s10 }
   0x8   : > { %s803_s18 = smov (%p26_p0, %s25_s18), 0  ;;  %s805_s19 = smov (!%p26_p0, %s28_s19), %s589_s15 }
   0x9   : > { %s33_s21 = ssub.s32 %s585_s14, %s803_s18  ;;  %p45_p2 = scmp.eq.s32.totalorder %s593_s16, 0 }
   0xa   : > { %p30_p3 = scmp.ge.s32.totalorder %s805_s19, 2  ;;  %p50_p4 = scmp.ne.s32.totalorder %s569_s10, %s565_s9 }
   0xb   : > { %p664_p5 = por %p45_p2, %p44_p1  ;;  %p51_p6 = scmp.eq.s32.totalorder %s408_s17, 0 }
   0xc   : > { %s807_s19 = smov (%p30_p3, %s805_s19), 0  ;;  %p429_p8 = scmp.lt.s32.totalorder %s593_s16, 4 }
   0xd   : > { %p670_p7 = por %p51_p6, %p50_p4  ;;  %s32_s24 = ssub.s32 %s589_s15, %s807_s19 }
   0xe   : > { %s34_s25 = sor.u32 %s33_s21, %s32_s24  ;;  %s126_s26 = sand.u32 1, %s573_s11  }
   0xf   : > { %p35_p9 = scmp.eq.s32.totalorder %s34_s25, 0  ;;  %s412_s27 = sshll.u32 %s126_s26, 7 }
  0x10   : > { %s422_s28 = sshll.u32 %s585_s14, 4  ;;  %s415_s30 = sshll.u32 %s589_s15, 5 }
  0x11   : > { %s680_s29 = scalar_select %p35_p9, %s573_s11, %s37_s20  }
  0x12   : > { %s136_s3 = sadd.s32 %s422_s28, %s415_s30  ;;  %s130_s4 = scalar_lea.vmem [#allocation2], %s412_s27 }
  0x13   : > { %s141_s5 = sshll.u32 %s130_s4, 4  ;;  %s416_s6 = sshll.u32 %s136_s3, 3  ;;  %s142_s5 = int_to_ptr.vmem [resolvable:$true] %s141_s5 }
  0x14   : > { %s138_s9 = scalar_lea.hbm %s790_s0, %s416_s6  ;;  %p426_p10 = pnand %p429_p8, %p664_p5 }
  0x15   : > { %s139_s17 = sshll.u32 %s138_s9, 4  ;;  %p417_p11 = scmp.ge.s32.totalorder %s593_s16, 1  ;;  %s140_s17 = int_to_ptr.hbm [resolvable:$true] %s139_s17 }
  0x16   : > { %s127_s21 = scalar_lea.sflag [#allocation3], %s126_s26  ;;  %s595_s20 = smov 128  }
  0x17   : > { %s596_s24 = smov 8   ;;  %p149_p12 = scmp.lt.s32.totalorder %s593_s16, 5 }
  0x18   : > { %428 = dma.hbm_to_vmem [thread:$0]  (!%p426_p10), %s140_s17, 2048, %s142_s5, %s127_s21, %s595_s20, %s595_s20, %s596_s24  }
  0x19   : > { %p150_p13 = pnand %p417_p11, %p149_p12 }
  0x1a   : > { %s155_s25 = sand.u32 (!%p150_p13), 1, %s569_s10  }
  0x1b   : > { %153 = sbr.rel (%p150_p13) target bundleno = 92 (0x5c), region = 24  ;;  %s418_s27 = sshll.u32 (!%p150_p13), %s155_s25, 7 }
  0x1c   : > { %s156_s28 = scalar_lea.sflag (!%p150_p13), [#allocation3], %s155_s25  ;;  %s693_s30 = scalar_lea.vmem (!%p150_p13), [#allocation2], %s418_s27 }
  0x20   : > { %560 = dma.done.wait (%p670_p7), %s156_s28, 2048  }
  0x21   : > { %562 = vsyncadd (%p670_p7), %s156_s28, 4294965248  ;;  %p183_p0 = scmp.lt.s32.totalorder %s581_s13, 1  ;;  %vm205_vm0 = vcmask 523264   ;;  %v189_v0 = vld [vmem:[%s693_s30] sm:$0xff]  ;;  %v190_v1 = vld [vmem:[%s693_s30 + $0x8] sm:$0xff]  ;;  %p419_p1 = scmp.ne.s32.totalorder %s577_s12, 0 }
  0x22   : > { %v191_v2 = vld [vmem:[%s693_s30 + $0x10] sm:$0xff]  ;;  %v206_v3 = vsel %vm205_vm0, %v189_v0, 0.0  ;;  %v207_v4 = vsel %vm205_vm0, %v190_v1, 0.0  ;;  %v192_v6 = vld [vmem:[%s693_s30 + $0x18] sm:$0xff]  ;;  %v193_v9 = vld [vmem:[%s693_s30 + $0x20] sm:$0xff]  ;;  %v243_v14 = vmul.f32 %v189_v0, %v189_v0  ;;  %v244_v15 = vmul.f32 %v190_v1, %v190_v1 }
  0x23   : > { %s809_s13 = smov (!%p183_p0, %s581_s13), 1  ;;  %v209_v5 = vsel %vm205_vm0, %v191_v2, 0.0  ;;  %v208_v7 = vadd.f32 %v207_v4, %v206_v3  ;;  %v211_v8 = vsel %vm205_vm0, %v192_v6, 0.0  ;;  %v213_v11 = vsel %vm205_vm0, %v193_v9, 0.0  ;;  %v194_v12 = vld [vmem:[%s693_s30 + $0x28] sm:$0xff]  ;;  %v195_v18 = vld [vmem:[%s693_s30 + $0x30] sm:$0xff] }
  0x24   : > { %s704_s3 = scalar_lea.vmem %s791_s1, %s809_s13  ;;  %s709_s23 = scalar_lea.vmem %s792_s2, %s809_s13  ;;  %v245_v16 = vmul.f32 %v191_v2, %v191_v2  ;;  %v215_v17 = vsel %vm205_vm0, %v194_v12, 0.0  ;;  %v246_v20 = vmul.f32 %v192_v6, %v192_v6  ;;  %v217_v21 = vsel %vm205_vm0, %v195_v18, 0.0  ;;  %v196_v23 = vld [vmem:[%s693_s30 + $0x38] sm:$0xff]  ;;  %v197_v30 = vld [vmem:[%s693_s30 + $0x40] sm:$0xff]  ;;  %v198_v36 = vld [vmem:[%s693_s30 + $0x48] sm:$0xff] }
  0x25   : > { %v210_v10 = vadd.f32 %v209_v5, %v208_v7  ;;  %v247_v22 = vmul.f32 %v193_v9, %v193_v9  ;;  %v259_v25 = vsel %vm205_vm0, %v243_v14, 0.0  ;;  %v260_v26 = vsel %vm205_vm0, %v244_v15, 0.0  ;;  %v199_v42 = vld [vmem:[%s693_s30 + $0x50] sm:$0xff]  ;;  %v200_v48 = vld [vmem:[%s693_s30 + $0x58] sm:$0xff]  ;;  %v201_v54 = vld [vmem:[%s693_s30 + $0x60] sm:$0xff] }
  0x26   : > { %v262_v27 = vsel %vm205_vm0, %v245_v16, 0.0  ;;  %v219_v28 = vsel %vm205_vm0, %v196_v23, 0.0  ;;  %v261_v29 = vadd.f32 %v260_v26, %v259_v25  ;;  %v248_v32 = vmul.f32 %v194_v12, %v194_v12  ;;  %v202_v60 = vld [vmem:[%s693_s30 + $0x68] sm:$0xff]  ;;  %v203_v2 = vld [vmem:[%s693_s30 + $0x70] sm:$0xff] }
  0x27   : > { %v212_v13 = vadd.f32 %v211_v8, %v210_v10  ;;  %v264_v33 = vsel %vm205_vm0, %v246_v20, 0.0  ;;  %v221_v34 = vsel %vm205_vm0, %v197_v30, 0.0  ;;  %v249_v38 = vmul.f32 %v195_v18, %v195_v18  ;;  %v204_v8 = vld [vmem:[%s693_s30 + $0x78] sm:$0xff] }
  0x28   : > { %v263_v35 = vadd.f32 %v262_v27, %v261_v29  ;;  %v266_v39 = vsel %vm205_vm0, %v247_v22, 0.0  ;;  %v223_v40 = vsel %vm205_vm0, %v198_v36, 0.0  ;;  %v250_v44 = vmul.f32 %v196_v23, %v196_v23 }
  0x29   : > { %v214_v19 = vadd.f32 %v213_v11, %v212_v13  ;;  %v268_v45 = vsel %vm205_vm0, %v248_v32, 0.0  ;;  %v225_v46 = vsel %vm205_vm0, %v199_v42, 0.0  ;;  %v251_v50 = vmul.f32 %v197_v30, %v197_v30 }
  0x2a   : > { %v265_v41 = vadd.f32 %v264_v33, %v263_v35  ;;  %v270_v51 = vsel %vm205_vm0, %v249_v38, 0.0  ;;  %v227_v52 = vsel %vm205_vm0, %v200_v48, 0.0  ;;  %v252_v56 = vmul.f32 %v198_v36, %v198_v36 }
  0x2b   : > { %v216_v24 = vadd.f32 %v215_v17, %v214_v19  ;;  %v272_v57 = vsel %vm205_vm0, %v250_v44, 0.0  ;;  %v229_v58 = vsel %vm205_vm0, %v201_v54, 0.0  ;;  %v253_v62 = vmul.f32 %v199_v42, %v199_v42 }
  0x2c   : > { %v267_v47 = vadd.f32 %v266_v39, %v265_v41  ;;  %v274_v63 = vsel %vm205_vm0, %v251_v50, 0.0  ;;  %v231_v0 = vsel %vm205_vm0, %v202_v60, 0.0  ;;  %v254_v4 = vmul.f32 %v200_v48, %v200_v48 }
  0x2d   : > { %v218_v31 = vadd.f32 %v217_v21, %v216_v24  ;;  %v276_v5 = vsel %vm205_vm0, %v252_v56, 0.0  ;;  %v233_v6 = vsel %vm205_vm0, %v203_v2, 0.0  ;;  %v255_v10 = vmul.f32 %v201_v54, %v201_v54 }
  0x2e   : > { %v269_v53 = vadd.f32 %v268_v45, %v267_v47  ;;  %v278_v11 = vsel %vm205_vm0, %v253_v62, 0.0  ;;  %v235_v12 = vsel %vm205_vm0, %v204_v8, 0.0  ;;  %v256_v15 = vmul.f32 %v202_v60, %v202_v60 }
  0x2f   : > { %v220_v37 = vadd.f32 %v219_v28, %v218_v31  ;;  %v280_v16 = vsel %vm205_vm0, %v254_v4, 0.0  ;;  %v257_v19 = vmul.f32 %v203_v2, %v203_v2  ;;  %v282_v20 = vsel %vm205_vm0, %v255_v10, 0.0 }
  0x30   : > { %v271_v59 = vadd.f32 %v270_v51, %v269_v53  ;;  %v258_v23 = vmul.f32 %v204_v8, %v204_v8  ;;  %v284_v24 = vsel %vm205_vm0, %v256_v15, 0.0 }
  0x31   : > { %v222_v43 = vadd.f32 %v221_v34, %v220_v37  ;;  %v286_v27 = vsel %vm205_vm0, %v257_v19, 0.0 }
  0x32   : > { %v273_v1 = vadd.f32 %v272_v57, %v271_v59  ;;  %v288_v30 = vsel %vm205_vm0, %v258_v23, 0.0 }
  0x33   : > { %v224_v49 = vadd.f32 %v223_v40, %v222_v43 }
  0x34   : > { %v275_v7 = vadd.f32 %v274_v63, %v273_v1 }
  0x35   : > { %v226_v55 = vadd.f32 %v225_v46, %v224_v49 }
  0x36   : > { %v277_v13 = vadd.f32 %v276_v5, %v275_v7 }
  0x37   : > { %v228_v61 = vadd.f32 %v227_v52, %v226_v55 }
  0x38   : > { %v279_v17 = vadd.f32 %v278_v11, %v277_v13 }
  0x39   : > { %v230_v3 = vadd.f32 %v229_v58, %v228_v61 }
  0x3a   : > { %v281_v21 = vadd.f32 %v280_v16, %v279_v17 }
  0x3b   : > { %v232_v9 = vadd.f32 %v231_v0, %v230_v3 }
  0x3c   : > { %v283_v25 = vadd.f32 %v282_v20, %v281_v21 }
  0x3d   : > { %v234_v14 = vadd.f32 %v233_v6, %v232_v9 }
  0x3e   : > { %v285_v28 = vadd.f32 %v284_v24, %v283_v25 }
  0x3f   : > { %v236_v18 = vadd.f32 %v235_v12, %v234_v14 }
  0x40   : > { %v287_v31 = vadd.f32 %v286_v27, %v285_v28 }
  0x41   : > { %v237_v22 = vrot.slane %v236_v18, 4 }
  0x42   : > { %v289_v33 = vadd.f32 %v288_v30, %v287_v31 }
  0x43   : > { %v238_v26 = vadd.f32 %v237_v22, %v236_v18 }
  0x44   : > { %v290_v35 = vrot.slane %v289_v33, 4 }
  0x45   : > { %v239_v29 = vrot.slane %v238_v26, 2 }
  0x46   : > { %v291_v37 = vadd.f32 %v290_v35, %v289_v33 }
  0x47   : > { %v240_v32 = vadd.f32 %v239_v29, %v238_v26 }
  0x48   : > { %v292_v38 = vrot.slane %v291_v37, 2 }
  0x49   : > { %v241_v34 = vrot.slane %v240_v32, 1 }
  0x4a   : > { %v293_v39 = vadd.f32 %v292_v38, %v291_v37  ;;  %299 = sbr.rel (%p419_p1) target bundleno = 82 (0x52), region = 32 }
  0x4b   : > { %v242_v36 = vadd.f32 %v241_v34, %v240_v32 }
  0x4c   : > { %v294_v40 = vrot.slane %v293_v39, 1 }
  0x4e   : > { %v295_v41 = vadd.f32 %v294_v40, %v293_v39 }
  0x4f   : > { %vm300_vm1 = vcmask 516096   ;;  %v597_v42 = vmov 0.0  }
  0x50   : > { %301 = vst.msk [vmem:[%s704_s3] sm:$0x1] %vm300_vm1, %v597_v42 }
  0x51   : > { %302 = vst.msk [vmem:[%s709_s23] sm:$0x1] %vm300_vm1, %v597_v42 }
  0x52 PF: > { %vm305_vm2 = vcmask 516096  }
  0x57   : > { %v303_v43 = vld [vmem:[%s704_s3] sm:$0x1] }
  0x58   : > { %v307_v44 = vld [vmem:[%s709_s23] sm:$0x1]  ;;  %v304_v45 = vadd.f32 %v303_v43, %v242_v36 }
  0x59   : > { %v308_v46 = vadd.f32 %v307_v44, %v295_v41 }
  0x5a   : > { %306 = vst.msk [vmem:[%s704_s3] sm:$0x1] %vm305_vm2, %v304_v45 }
  0x5b   : > { %309 = vst.msk [vmem:[%s709_s23] sm:$0x1] %vm305_vm2, %v308_v46 }
  0x5c PF: > { %s16_s16 = sadd.s32 1, %s593_s16   ;;  %s795_s9 = smov %s569_s10 }
  0x5d   : > { %p13_p2 = scmp.ge.s32.totalorder %s16_s16, 6   ;;  %s796_s10 = smov %s573_s11 }
  0x5e   : > { %s797_s11 = smov %s680_s29  ;;  %s798_s12 = smov %s585_s14 }
  0x5f   : > { %s799_s13 = smov %s589_s15  ;;  %s800_s14 = smov %s803_s18 }
  0x60   : > { %s801_s15 = smov %s807_s19  ;;  %15 = sbr.rel (!%p13_p2) target bundleno = 5 (0x5), region = 80 }
  0x65   :  { %339 = vsyncpa [#allocation3], 1 }
  0x66   :  { %341 = vsyncpa [#allocation3 + $0x1], 1 }

// kernel: downsample_forward.3
= control target key start
LH: loop header
LB: loop body
LE: loop exit
PB: predicated region body
PF: predicated region fallthrough
CT: control target
= control target key end

     0   :  { %s2655_s0 = inlined_call_operand.vmem [shape: f32[2,8,2,8,128], index: 0, kind: input, shape index: {}, may-alias: {0,1,2}]   ;;  %s2656_s1 = inlined_call_operand.vmem [shape: f32[2,8,2,8,128], index: 1, kind: input, shape index: {}, may-alias: {0,1,2}]   ;;  %s2657_s2 = inlined_call_operand.vmem [shape: f32[2,8,2,8,128], index: 2, kind: input, shape index: {}, may-alias: {0,1,2}]   ;;  %s2658_s3 = inlined_call_operand.vmem [shape: f32[2,1,128], index: 3, kind: input, shape index: {}]   ;;  %s2659_s4 = inlined_call_operand.vmem [shape: f32[2,1,128], index: 4, kind: input, shape index: {}]   ;;  %s2660_s5 = inlined_call_operand.vmem [shape: bf16[3,128,32], index: 5, kind: input, shape index: {}]   ;;  %s2661_s6 = inlined_call_operand.vmem [shape: bf16[3,64,32], index: 6, kind: input, shape index: {}]   ;;  %s2662_s7 = inlined_call_operand.vmem [shape: f32[1,32], index: 7, kind: input, shape index: {}]   ;;  %s2663_s8 = inlined_call_operand.hbm [shape: f32[2,8,8,32], index: 8, kind: output, shape index: {}]  }
   0x1   :  { %2667 = sst [smem:[#allocation9_spill]] %s2655_s0 }
   0x2   :  { %13 = vsyncpa [#allocation5], 0 }
   0x3   :  { %15 = vsyncpa [#allocation5 + $0x1], 0  ;;  %s2080_s27 = smov 0   ;;  %s2082_s28 = smov 0  }
   0x4   :  { %s2084_s29 = smov 0   ;;  %s2086_s30 = smov 0  }
   0x5   :  { %s2088_s9 = smov 0   ;;  %s2090_s10 = smov 0  }
   0x6   :  { %s2092_s11 = smov 0   ;;  %s2094_s12 = smov 0  }
   0x7 LB: > { %s1515_s13 = sadd.s32 4294967295, %s2030_s12   ;;  %s1516_s14 = sadd.s32 4294967294, %s2030_s12   ;;  %s2030_s12 = sphi %s2094_s12, %s21_s12   ;;  %s2026_s11 = sphi %s2092_s11, %s2709_s11   ;;  %s2022_s10 = sphi %s2090_s10, %s2708_s10   ;;  %s2018_s9 = sphi %s2088_s9, %s2707_s9   ;;  %s2014_s30 = sphi %s2086_s30, %s2706_s30   ;;  %s2010_s29 = sphi %s2084_s29, %s2705_s29   ;;  %s2006_s28 = sphi %s2082_s28, %s2704_s28   ;;  %s2002_s27 = sphi %s2080_s27, %s2703_s27  }
   0x8   : > { %s30_s15 = sadd.s32 1, %s2022_s10  ;;  %s33_s16 = sadd.s32 1, %s2026_s11 }
   0x9   : > { %p31_p0 = scmp.ge.s32.totalorder %s30_s15, 2  ;;  %p49_p1 = scmp.ne.s32.totalorder %s2010_s29, %s2006_s28 }
   0xa   : > { %p50_p2 = scmp.eq.s32.totalorder %s2030_s12, 0  ;;  %p260_p5 = scmp.eq.s32.totalorder %s1515_s13, 3 }
   0xb   : > { %s2711_s15 = smov (%p31_p0, %s30_s15), 0  ;;  %s2713_s16 = smov (!%p31_p0, %s33_s16), %s2026_s11 }
   0xc   : > { %2668 = sst [smem:[#allocation7_spill]] %s2711_s15  ;;  %s38_s17 = ssub.s32 %s2022_s10, %s2711_s15 }
   0xd   : > { %p2132_p3 = por %p50_p2, %p49_p1  ;;  %p35_p4 = scmp.ge.s32.totalorder %s2713_s16, 2 }
   0xe   : > { %p265_p6 = scmp.ne.s32.totalorder %s2006_s28, %s2002_s27  ;;  %p266_p7 = scmp.eq.s32.totalorder %s1516_s14, 3 }
   0xf   : > { %s2715_s16 = smov (%p35_p4, %s2713_s16), 0  ;;  %p2140_p8 = por %p260_p5, %p49_p1 }
  0x10   : > { %2670 = sst [smem:[#allocation8_spill]] %s2715_s16  ;;  %p2144_p9 = por %p266_p7, %p265_p6 }
  0x11   : > { %s37_s21 = ssub.s32 %s2026_s11, %s2715_s16  ;;  %s42_s23 = sadd.s32 1, %s2010_s29 }
  0x12   : > { %s39_s22 = sor.u32 %s38_s17, %s37_s21  ;;  %p1522_p11 = scmp.ge.s32.totalorder %s2030_s12, 4 }
  0x13   : > { %p40_p10 = scmp.eq.s32.totalorder %s39_s22, 0 }
  0x14   : > { %291 = sbr.rel (%p1522_p11) target bundleno = 50 (0x32), region = 28 }
  0x15   : > { %s2152_s24 = scalar_select %p40_p10, %s2010_s29, %s42_s23  }
  0x19   : > { %294 = sbr.rel (!%p2132_p3) target bundleno = 39 (0x27), region = 32  ;;  %s296_s25 = sand.u32 (%p2132_p3), 1, %s2010_s29  }
  0x1a   : > { %s1764_s26 = sshll.u32 (%p2132_p3), %s2022_s10, 3  ;;  %s1523_s13 = sshll.u32 (%p2132_p3), %s296_s25, 5 }
  0x1b   : > { %s1526_s14 = sshll.u32 (%p2132_p3), %s2026_s11, 4  ;;  %s2673_s0 = sld [smem:[#allocation9_spill]] (%p2132_p3) }
  0x1c   : > { %s302_s15 = sadd.s32 (%p2132_p3), %s1764_s26, %s1526_s14  ;;  %s298_s23 = scalar_lea.vmem (%p2132_p3), [#allocation2], %s1523_s13 }
  0x1d   : > { %s1527_s16 = sshll.u32 (%p2132_p3), %s302_s15, 3 }
  0x21   : > { %s304_s22 = scalar_lea.vmem %s2673_s0, %s1527_s16 }
  0x22   : > { %v339_v0 = vld [vmem:[%s304_s22] sm:$0xff]  ;;  %v341_v1 = vld [vmem:[%s304_s22 + $0x10] sm:$0xff] }
  0x23   : > { %v343_v2 = vld [vmem:[%s304_s22 + $0x20] sm:$0xff]  ;;  %340 = vst [vmem:[%s298_s23] sm:$0xff] %v339_v0  ;;  %v345_v3 = vld [vmem:[%s304_s22 + $0x30] sm:$0xff] }
  0x24   : > { %342 = vst [vmem:[%s298_s23 + $0x8] sm:$0xff] %v341_v1 }
  0x25   : > { %344 = vst [vmem:[%s298_s23 + $0x10] sm:$0xff] %v343_v2 }
  0x26   : > { %346 = vst [vmem:[%s298_s23 + $0x18] sm:$0xff] %v345_v3 }
  0x27 PF: > { %352 = sbr.rel (!%p2132_p3) target bundleno = 50 (0x32), region = 70  ;;  %s354_s15 = sand.u32 (%p2132_p3), 1, %s2010_s29  }
  0x28   : > { %s1529_s25 = sshll.u32 (%p2132_p3), %s2022_s10, 3  ;;  %s1528_s26 = sshll.u32 (%p2132_p3), %s354_s15, 5 }
  0x29   : > { %s1530_s16 = sshll.u32 (%p2132_p3), %s2026_s11, 4  ;;  %s356_s23 = scalar_lea.vmem (%p2132_p3), [#allocation3], %s1528_s26 }
  0x2a   : > { %s1401_s14 = sadd.s32 (%p2132_p3), %s1530_s16, %s1529_s25 }
  0x2b   : > { %s1531_s17 = sshll.u32 (%p2132_p3), %s1401_s14, 3 }
  0x2c   : > { %s1403_s22 = scalar_lea.vmem %s2656_s1, %s1531_s17 }
  0x2d   : > { %v1532_v4 = vld [vmem:[%s1403_s22 + $0x8] sm:$0xff]  ;;  %v1533_v5 = vld [vmem:[%s1403_s22 + $0x18] sm:$0xff] }
  0x2e   : > { %v1534_v6 = vld [vmem:[%s1403_s22 + $0x28] sm:$0xff]  ;;  %399 = vst [vmem:[%s356_s23] sm:$0xff] %v1532_v4  ;;  %v1535_v7 = vld [vmem:[%s1403_s22 + $0x38] sm:$0xff] }
  0x2f   : > { %401 = vst [vmem:[%s356_s23 + $0x8] sm:$0xff] %v1533_v5 }
  0x30   : > { %403 = vst [vmem:[%s356_s23 + $0x10] sm:$0xff] %v1534_v6 }
  0x31   : > { %405 = vst [vmem:[%s356_s23 + $0x18] sm:$0xff] %v1535_v7 }
  0x32 PF: > { %p1536_p12 = scmp.ge.s32.totalorder %s2030_s12, 1  ;;  %p443_p13 = scmp.lt.s32.totalorder %s2030_s12, 5 }
  0x34   : > { %p444_p0 = pnand %p1536_p12, %p443_p13 }
  0x35   : > { %s2666_s18 = sand.u32 (!%p444_p0), 1, %s2006_s28   ;;  %p520_p1 = scmp.lt.s32.totalorder (!%p444_p0), %s2018_s9, 1 }
  0x36   : > { %447 = sbr.rel (%p444_p0) target bundleno = 451 (0x1c3), region = 120  ;;  %s2177_s15 = sshll.u32 (!%p444_p0), %s2666_s18, 5 }
  0x37   : > { %s452_s26 = scalar_lea.vmem (!%p444_p0), [#allocation2], %s2177_s15  ;;  %s1540_s16 = sshll.u32 (!%p444_p0), %s2014_s30, 2 }
  0x38   : > { %s2193_s18 = scalar_lea.vmem (!%p444_p0), [#allocation3], %s2177_s15  ;;  %s1541_s0 = sadd.s32 (!%p444_p0), 4294967295, %s1540_s16 }
  0x39   : > { %p518_p2 = scmp.gt.s32.totalorder (!%p444_p0), %s1541_s0, 0  ;;  %p1542_p3 = scmp.lt.s32.totalorder (!%p444_p0), %s1541_s0, 7 }
  0x3a   : > { %p834_p4 = scmp.eq.s32.totalorder (!%p444_p0), %s2014_s30, 0  ;;  %s1760_s22 = sshll.u32 (!%p444_p0), %s2018_s9, 3 }
  0x3b   : > { %s2180_s25 = scalar_select %p520_p1, %s2018_s9, 1  ;;  %v549_v8 = vld [vmem:[%s452_s26 + $0x10] sm:$0xff]  ;;  %v550_v9 = vld [vmem:[%s452_s26 + $0x18] sm:$0xff]  ;;  %v547_v10 = vld [vmem:[%s452_s26] sm:$0xff] }
  0x3c   : > { %v548_v11 = vld [vmem:[%s452_s26 + $0x8] sm:$0xff]  ;;  %v681_v13 = vld [vmem:[%s2193_s18 + $0x10] sm:$0xff]  ;;  %s519_s26 = scalar_select %p518_p2, %s1541_s0, 0  ;;  %v679_v28 = vld [vmem:[%s2193_s18] sm:$0xff] }
  0x3d   : > { %s536_s21 = scalar_lea.vmem %s2658_s3, %s2180_s25  ;;  %s539_s23 = scalar_lea.vmem %s2659_s4, %s2180_s25  ;;  %v680_v12 = vld [vmem:[%s2193_s18 + $0x8] sm:$0xff] }
  0x3e   : > { %v2197_v14 = vld [vmem:[%s536_s21] ss:$0 sm:$0xff]  ;;  %s1548_s14 = sshll.u32 %s2180_s25, 4  ;;  %s2717_s26 = smov (!%p1542_p3, %s519_s26), 7 }
  0x3f   : > { %v2199_v15 = vld [vmem:[%s539_s23] ss:$0 sm:$0xff]  ;;  %v556_v16 = vmul.f32 %v2197_v14, %v549_v8  ;;  %v557_v17 = vmul.f32 %v2197_v14, %v550_v9  ;;  %v554_v18 = vmul.f32 %v2197_v14, %v547_v10  ;;  %v555_v19 = vmul.f32 %v2197_v14, %v548_v11  ;;  %s1547_s17 = sshll.u32 %s2717_s26, 1  ;;  %s2032_s23 = smov 64   ;;  %v682_v9 = vld [vmem:[%s2193_s18 + $0x18] sm:$0xff] }
  0x40   : > { %v684_v20 = vmul.f32 %v2197_v14, %v680_v12  ;;  %v685_v21 = vmul.f32 %v2197_v14, %v681_v13  ;;  %v683_v34 = vmul.f32 %v2197_v14, %v679_v28  ;;  %s1434_s21 = sadd.s32 %s1548_s14, %s1547_s17  ;;  %s2700_s17 = sand.u32 1, %s2006_s28  }
  0x41   : > { %v2210_v22 = vadd.f32 %v2199_v15, %v556_v16  ;;  %v2213_v23 = vadd.f32 %v2199_v15, %v557_v17  ;;  %v2216_v24 = vadd.f32 %v2199_v15, %v554_v18  ;;  %v2219_v25 = vadd.f32 %v2199_v15, %v555_v19  ;;  %s1549_s13 = sshll.u32 %s1434_s21, 3  ;;  %s1349_s21 = scalar_lea.sflag [#allocation5], %s2700_s17 }
  0x42   : > { %v2222_v26 = vadd.f32 %v2199_v15, %v684_v20  ;;  %v2225_v27 = vadd.f32 %v2199_v15, %v685_v21  ;;  %v2238_v36 = vadd.f32 %v2199_v15, %v683_v34  ;;  %s1436_s0 = scalar_lea.vmem %s2657_s2, %s1549_s13 }
  0x43   : > { %v1552_v29 = vmul.f32 -1.442695, %v2210_v22  ;;  %v1553_v30 = vmul.f32 -1.442695, %v2213_v23  ;;  %v1550_v31 = vmul.f32 -1.442695, %v2216_v24 }
  0x44   : > { %v1551_v32 = vmul.f32 -1.442695, %v2219_v25  ;;  %v1555_v33 = vmul.f32 -1.442695, %v2222_v26  ;;  %v1556_v35 = vmul.f32 -1.442695, %v2225_v27 }
  0x45   : > { %1900 = vpow2.f32 %v1552_v29  ;;  %v1554_v42 = vmul.f32 -1.442695, %v2238_v36  ;;  %v1558_v44 = vld [vmem:[%s1436_s0 + $0x8] sm:$0xff]  ;;  %s835_s14 = scalar_select %p834_p4, 1, 0 }
  0x46   : > { %1902 = vpow2.f32 %v1553_v30  ;;  %v2256_v54 = vmul.f32 %v2197_v14, %v1558_v44 }
  0x47   : > { %1904 = vpow2.f32 %v1550_v31 }
  0x48   : > { %1906 = vpow2.f32 %v1551_v32 }
  0x49   : > { %1908 = vpow2.f32 %v1555_v33 }
  0x4a   : > { %1910 = vpow2.f32 %v1556_v35 }
  0x4b   : > { %v1901_v37 = vpop.eup %1900 }
  0x4c   : > { %v1903_v38 = vpop.eup %1902  ;;  %v579_v39 = vadd.f32 1.0, %v1901_v37 }
  0x4d   : > { %v1905_v40 = vpop.eup %1904  ;;  %v2243_v41 = vadd.f32 1.0, %v1903_v38 }
  0x4e   : > { %v1907_v43 = vpop.eup %1906  ;;  %1912 = vrcp.f32 %v579_v39  ;;  %v620_v46 = vand.u32 2147483647, %v579_v39  ;;  %v622_v47 = vand.u32 2147483648, %v579_v39  ;;  %v2248_v50 = vadd.f32 1.0, %v1905_v40 }
  0x4f   : > { %v1909_v45 = vpop.eup %1908  ;;  %1914 = vrcp.f32 %v2243_v41  ;;  %v635_v49 = vand.u32 2147483647, %v2243_v41  ;;  %v2250_v51 = vadd.f32 1.0, %v1907_v43  ;;  %v637_v52 = vand.u32 2147483648, %v2243_v41 }
  0x50   : > { %v1911_v48 = vpop.eup %1910  ;;  %v2253_v53 = vadd.f32 1.0, %v1909_v45  ;;  %1916 = vpow2.f32 %v1554_v42  ;;  %vm616_vm0 = vweird.f32 %v579_v39  ;;  %vm631_vm1 = vweird.f32 %v2243_v41 }
  0x51   : > { %1918 = vrcp.f32 %v2248_v50  ;;  %v592_v55 = vand.u32 2147483648, %v2248_v50  ;;  %vm2261_vm2 = vcmp.eq.f32.partialorder %v620_v46, 8.507059e+37  ;;  %v623_v57 = vor.u32 1.1754944e-38, %v622_v47 }
  0x52   : > { %v590_v58 = vand.u32 2147483647, %v2248_v50  ;;  %1920 = vrcp.f32 %v2250_v51  ;;  %v2267_v59 = vadd.f32 1.0, %v1911_v48  ;;  %vm2269_vm3 = vcmp.eq.f32.partialorder %v635_v49, 8.507059e+37 }
  0x53   : > { %v605_v62 = vand.u32 2147483647, %v2250_v51  ;;  %v607_v63 = vand.u32 2147483648, %v2250_v51  ;;  %1922 = vrcp.f32 %v2253_v53  ;;  %v638_v2 = vor.u32 1.1754944e-38, %v637_v52 }
  0x54   : > { %v1913_v60 = vpop.eup %1912  ;;  %vm586_vm4 = vweird.f32 %v2248_v50  ;;  %vm601_vm5 = vweird.f32 %v2250_v51  ;;  %v593_v4 = vor.u32 1.1754944e-38, %v592_v55  ;;  %v731_v5 = vand.u32 2147483647, %v2253_v53 }
  0x55   : > { %v1915_v0 = vpop.eup %1914  ;;  %v612_v1 = vmul.f32 %v1913_v60, %v579_v39  ;;  %v733_v6 = vand.u32 2147483648, %v2253_v53  ;;  %vm617_vm6 = vweird.f32 %v1913_v60  ;;  %vm2281_vm7 = vcmp.eq.f32.partialorder %v590_v58, 8.507059e+37 }
  0x56   : > { %v627_v3 = vmul.f32 %v1915_v0, %v2243_v41  ;;  %v1917_v7 = vpop.eup %1916  ;;  %vm727_vm8 = vweird.f32 %v2253_v53  ;;  %1924 = vrcp.f32 %v2267_v59  ;;  %vm632_vm9 = vweird.f32 %v1915_v0  ;;  %vm2300_vm13 = vmor %vm616_vm0, %vm617_vm6 }
  0x57   : > { %v613_v8 = vsub.f32 1.0, %v612_v1  ;;  %v1919_v10 = vpop.eup %1918  ;;  %vm2287_vm10 = vcmp.eq.f32.partialorder %v605_v62, 8.507059e+37  ;;  %v608_v13 = vor.u32 1.1754944e-38, %v607_v63  ;;  %vm742_vm11 = vweird.f32 %v2267_v59  ;;  %vm2309_vm14 = vmor %vm631_vm1, %vm632_vm9 }
  0x58   : > { %v628_v11 = vsub.f32 1.0, %v627_v3  ;;  %v1921_v16 = vpop.eup %1920  ;;  %v582_v18 = vmul.f32 %v1919_v10, %v2248_v50  ;;  %vm2293_vm12 = vcmp.eq.f32.partialorder %v731_v5, 8.507059e+37  ;;  %v746_v20 = vand.u32 2147483647, %v2267_v59 }
  0x59   : > { %v614_v17 = vmul.f32 %v1913_v60, %v613_v8  ;;  %v1923_v21 = vpop.eup %1922  ;;  %v597_v30 = vmul.f32 %v1921_v16, %v2250_v51  ;;  %v734_v31 = vor.u32 1.1754944e-38, %v733_v6  ;;  %v748_v32 = vand.u32 2147483648, %v2267_v59 }
  0x5a   : > { %v629_v29 = vmul.f32 %v1915_v0, %v628_v11  ;;  %v583_v35 = vsub.f32 1.0, %v582_v18  ;;  %vm587_vm15 = vweird.f32 %v1919_v10  ;;  %v723_v37 = vmul.f32 %v1923_v21, %v2253_v53 }
  0x5b   : > { %v615_v33 = vadd.f32 %v1913_v60, %v614_v17  ;;  %v598_v39 = vsub.f32 1.0, %v597_v30  ;;  %vm602_vm0 = vweird.f32 %v1921_v16  ;;  %vm728_vm6 = vweird.f32 %v1923_v21  ;;  %vm2324_vm1 = vmor %vm586_vm4, %vm587_vm15 }
  0x5c   : > { %v630_v38 = vadd.f32 %v1915_v0, %v629_v29  ;;  %v1925_v40 = vpop.eup %1924  ;;  %v584_v43 = vmul.f32 %v1919_v10, %v583_v35  ;;  %v724_v44 = vsub.f32 1.0, %v723_v37  ;;  %v2316_v45 = vadd.f32 1.0, %v1917_v7  ;;  %v1783_v35 = vld [vmem:[%s2660_s5 + $0x60] sm:$0xff] }
  0x5d   : > { %v619_v42 = vsel %vm2300_vm13, %v1913_v60, %v615_v33  ;;  %v599_v48 = vmul.f32 %v1921_v16, %v598_v39  ;;  %v738_v49 = vmul.f32 %v1925_v40, %v2267_v59  ;;  %vm743_vm4 = vweird.f32 %v1925_v40 }
  0x5e   : > { %v624_v41 = vsel %vm2261_vm2, %v623_v57, %v619_v42  ;;  %v634_v46 = vsel %vm2309_vm14, %v1915_v0, %v630_v38  ;;  %v585_v56 = vadd.f32 %v1919_v10, %v584_v43  ;;  %vm2337_vm2 = vmor %vm601_vm5, %vm602_vm0  ;;  %v725_v50 = vmul.f32 %v1923_v21, %v724_v44 }
  0x5f   : > { %v639_v52 = vsel %vm2269_vm3, %v638_v2, %v634_v46  ;;  %v2332_v55 = vmul.f32 %v624_v41, %v2210_v22  ;;  %v600_v60 = vadd.f32 %v1921_v16, %v599_v48  ;;  %vm2347_vm3 = vmor %vm727_vm8, %vm728_vm6  ;;  %v739_v22 = vsub.f32 1.0, %v738_v49 }
  0x60   : > { %v2342_v58 = vmul.f32 %v639_v52, %v2213_v23  ;;  %v589_v51 = vsel %vm2324_vm1, %v1919_v10, %v585_v56  ;;  %v726_v62 = vadd.f32 %v1923_v21, %v725_v50  ;;  %1926 = vrcp.f32 %v2316_v45  ;;  %vm2373_vm5 = vmor %vm742_vm11, %vm743_vm4 }
  0x61   : > { %v2356_v23 = vadd.f32 %v2199_v15, %v2256_v54  ;;  %v594_v53 = vsel %vm2281_vm7, %v593_v4, %v589_v51  ;;  %v604_v0 = vsel %vm2337_vm2, %v1921_v16, %v600_v60  ;;  %v740_v1 = vmul.f32 %v1925_v40, %v739_v22 }
  0x62   : > { %v1887_v63 = vpack.i.bf16 %v2342_v58, %v2332_v55  ;;  %v609_v2 = vsel %vm2287_vm10, %v608_v13, %v604_v0  ;;  %v2367_v3 = vmul.f32 %v594_v53, %v2216_v24  ;;  %v730_v54 = vsel %vm2347_vm3, %v1923_v21, %v726_v62  ;;  %v1790_v21 = vld [vmem:[%s2661_s6 + $0x38] sm:$0xff] }
  0x63   : > { %v749_v4 = vor.u32 1.1754944e-38, %v748_v32  ;;  %v2379_v6 = vmul.f32 %v609_v2, %v2219_v25  ;;  %v735_v24 = vsel %vm2293_vm12, %v734_v31, %v730_v54  ;;  %v741_v7 = vadd.f32 %v1925_v40, %v740_v1  ;;  %1156 = vmatpush.bf16.msra.mxu3 %v1790_v21  ;;  %v1784_v31 = vld [vmem:[%s2660_s5 + $0x68] sm:$0xff] }
  0x64   : > { %1888 = vrot.lane.b32.xlu1 %v1887_v63, %s2032_s23  ;;  %vm747_vm7 = vcmp.eq.f32.partialorder %v746_v20, 8.507059e+37  ;;  %v1559_v8 = vmul.f32 -1.442695, %v2356_v23  ;;  %v2390_v11 = vmul.f32 %v735_v24, %v2222_v26  ;;  %v686_v25 = vmul.f32 %v2197_v14, %v682_v9  ;;  %v1786_v26 = vld [vmem:[%s2660_s5 + $0x78] sm:$0xff]  ;;  %v1772_v32 = vld [vmem:[%s2660_s5 + $0x28] sm:$0xff] }
  0x65   : > { %v1877_v59 = vpack.i.bf16 %v2379_v6, %v2367_v3  ;;  %v745_v10 = vsel %vm2373_vm5, %v1925_v40, %v741_v7  ;;  %v1774_v14 = vld [vmem:[%s2660_s5 + $0x38] sm:$0xff]  ;;  %1080 = vmatpush.bf16.msra.mxu2 %v1786_v26  ;;  %vm712_vm8 = vweird.f32 %v2316_v45  ;;  %v716_v39 = vand.u32 2147483647, %v2316_v45  ;;  %v1771_v7 = vld [vmem:[%s2660_s5 + $0x20] sm:$0xff]  ;;  %v1780_v26 = vld [vmem:[%s2660_s5 + $0x48] sm:$0xff] }
  0x66   : > { %v1927_v12 = vpop.eup %1926  ;;  %v750_v13 = vsel %vm747_vm7, %v749_v4, %v745_v10  ;;  %1928 = vpow2.f32 %v1559_v8  ;;  %v2399_v18 = vadd.f32 %v2199_v15, %v686_v25  ;;  %984 = vmatpush.bf16.msra.mxu1 %v1774_v14  ;;  %v1785_v15 = vld [vmem:[%s2660_s5 + $0x70] sm:$0xff]  ;;  %v718_v40 = vand.u32 2147483648, %v2316_v45  ;;  %v1782_v8 = vld [vmem:[%s2660_s5 + $0x58] sm:$0xff] }
  0x67   : > { %1878 = vrot.lane.b32.xlu0 %v1877_v59, %s2032_s23  ;;  %v2395_v16 = vmul.f32 %v750_v13, %v2225_v27  ;;  %v708_v17 = vmul.f32 %v1927_v12, %v2316_v45  ;;  %v1773_v27 = vld [vmem:[%s2660_s5 + $0x30] sm:$0xff]  ;;  %vm713_vm9 = vweird.f32 %v1927_v12  ;;  %vm717_vm11 = vcmp.eq.f32.partialorder %v716_v39, 8.507059e+37  ;;  %v1778_v9 = vld [vmem:[%s2661_s6 + $0x18] sm:$0xff]  ;;  %v1788_v59 = vld [vmem:[%s2661_s6 + $0x28] sm:$0xff] }
  0x68   : > { %v1557_v20 = vmul.f32 -1.442695, %v2399_v18  ;;  %vm2432_vm10 = vmor %vm712_vm8, %vm713_vm9  ;;  %v719_v46 = vor.u32 1.1754944e-38, %v718_v40  ;;  %v1770_v10 = vld [vmem:[%s2660_s5 + $0x18] sm:$0xff]  ;;  %909 = vmatpush.bf16.msra.mxu0 %v1778_v9  ;;  %v1781_v25 = vld [vmem:[%s2660_s5 + $0x50] sm:$0xff]  ;;  %vm898_vm5 = vcmask 523264  }
  0x69   : > { %v1892_v19 = vpack.i.bf16 %v2395_v16, %v2390_v11  ;;  %v709_v28 = vsub.f32 1.0, %v708_v17  ;;  %1081 = vmatpush.bf16.msra.mxu2 %v1785_v15  ;;  %v1787_v13 = vld [vmem:[%s2661_s6 + $0x20] sm:$0xff]  ;;  %v1777_v17 = vld [vmem:[%s2661_s6 + $0x10] sm:$0xff]  ;;  %v671_v15 = vpack.c.bf16 %v2367_v3, %v2367_v3  ;;  %vm1343_vm7 = vcmask 261120  }
  0x6a   : > { %1930 = vpow2.f32 %v1557_v20  ;;  %985 = vmatpush.bf16.msra.mxu1 %v1773_v27  ;;  %v836_v20 = vstv %s835_s14  ;;  %v672_v27 = vpack.c.bf16 %v2379_v6, %v2379_v6  ;;  %s2598_s14 = scalar_lea.vmem [#allocation4], %s2177_s15  ;;  %s1360_s15 = sadd.s32 %s1760_s22, %s1540_s16 }
  0x6b   : > { %v710_v33 = vmul.f32 %v1927_v12, %v709_v28  ;;  %v1024_v3 = vunpack.c.l.b16 %v671_v15  ;;  %vm2502_vm4 = vcmp.eq.s32.totalorder %v836_v20, 1  ;;  %v1794_v20 = vld [vmem:[%s2660_s5 + $0x98] sm:$0xff]  ;;  %v1799_v15 = vld [vmem:[%s2661_s6 + $0x40] sm:$0xff]  ;;  %s1761_s0 = sshll.u32 %s1360_s15, 3  ;;  %s1363_s30 = sshll.u32 %s2598_s14, 4  ;;  %s1364_s30 = int_to_ptr.vmem [resolvable:$true] %s1363_s30 }
  0x6c   : > { %1893 = vrot.lane.b32.xlu1 %v1892_v19, %s2032_s23  ;;  %v1929_v29 = vpop.eup %1928  ;;  %910 = vmatpush.bf16.msra.mxu0 %v1777_v17  ;;  %s1362_s26 = scalar_lea.hbm %s2663_s8, %s1761_s0  ;;  %s1956_s15 = scalar_lea.hbm %s2663_s8, 128 }
  0x6d   : > { %v809_v30 = vadd.f32 1.0, %v1929_v29  ;;  %1082 = vmatpush.bf16.msra.mxu2 %v1784_v31  ;;  %v711_v38 = vadd.f32 %v1927_v12, %v710_v33  ;;  %v1776_v29 = vld [vmem:[%s2661_s6 + $0x8] sm:$0xff]  ;;  %v1779_v31 = vld [vmem:[%s2660_s5 + $0x40] sm:$0xff]  ;;  %s1365_s16 = sshll.u32 %s1362_s26, 4  ;;  %s1366_s16 = int_to_ptr.hbm [resolvable:$true] %s1365_s16 }
  0x6e   : > { %986 = vmatpush.bf16.msra.mxu1 %v1772_v32  ;;  %v1025_v32 = vunpack.c.l.b16 %v672_v27  ;;  %s1950_s13 = sshra.s32 %s1366_s16, 4  ;;  %s1951_s13 = int_to_ptr.hbm [resolvable:$true] %s1950_s13 }
  0x6f   : > { %1932 = vrcp.f32 %v809_v30  ;;  %v715_v41 = vsel %vm2432_vm10, %v1927_v12, %v711_v38  ;;  %v821_v47 = vand.u32 2147483648, %v809_v30  ;;  %vm815_vm12 = vweird.f32 %v809_v30  ;;  %s1952_s25 = scalar_lea.hbm %s1951_s13, 32  ;;  %p1957_p10 = scmp.lt.s32.totalorder %s1951_s13, %s2663_s8 }
  0x70   : > { %v1931_v34 = vpop.eup %1930  ;;  %v819_v49 = vand.u32 2147483647, %v809_v30  ;;  %v720_v56 = vsel %vm717_vm11, %v719_v46, %v715_v41  ;;  %v544_v12 = vlaneseq  ;;  %911 = vmatpush.bf16.msra.mxu0 %v1776_v29  ;;  %v1028_v38 = vpack.c.b16 %v1025_v32, %v1024_v3  ;;  %v1775_v41 = vld [vmem:[%s2661_s6] sm:$0xff]  ;;  %p1953_p5 = scmp.ne.s32.totalorder %s1951_s13, %s1952_s25  ;;  %p1958_p11 = scmp.lt.s32.totalorder %s1956_s15, %s1952_s25 }
  0x71   : > { %v706_v37 = vadd.f32 1.0, %v1931_v34  ;;  %1083 = vmatpush.bf16.msra.mxu2 %v1783_v35  ;;  %v822_v57 = vor.u32 1.1754944e-38, %v821_v47  ;;  %v2439_v62 = vmul.f32 %v720_v56, %v2238_v36  ;;  %v1767_v46 = vld [vmem:[%s2660_s5] sm:$0xff] }
  0x72   : > { %vm820_vm15 = vcmp.eq.f32.partialorder %v819_v49, 8.507059e+37  ;;  %987 = vmatpush.bf16.msra.mxu1 %v1771_v7  ;;  %v2486_v14 = vshrl.u32 %v544_v12, 7  ;;  %v797_v12 = vpack.c.bf16 %v2395_v16, %v2395_v16  ;;  %p1954_p6 = pnand %p1953_p5, %p2140_p8  ;;  %p1959_p12 = por %p1958_p11, %p1957_p10 }
  0x73   : > { %1934 = vrcp.f32 %v706_v37  ;;  %v763_v61 = vand.u32 2147483648, %v706_v37  ;;  %vm757_vm0 = vweird.f32 %v706_v37  ;;  %v761_v51 = vand.u32 2147483647, %v706_v37 }
  0x74   : > { %vm546_vm3 = vcmp.eq.s32.totalorder %v2486_v14, 0  ;;  %v795_v39 = vpack.c.bf16 %v2439_v62, %v2439_v62  ;;  %912 = vmatpush.bf16.msra.mxu0 %v1775_v41  ;;  %v931_v17 = vunpack.c.l.b16 %v797_v12  ;;  %v1899_v12 = vld [vmem:[%s2662_s7] ss:$0 sm:$0xff]  ;;  %p1955_p7 = pneg %p1954_p6 }
  0x75   : > { %v1933_v43 = vpop.eup %1932  ;;  %v764_v2 = vor.u32 1.1754944e-38, %v763_v61  ;;  %vm762_vm2 = vcmp.eq.f32.partialorder %v761_v51, 8.507059e+37  ;;  %1084 = vmatpush.bf16.msra.mxu2 %v1782_v8  ;;  %v1798_v51 = vld [vmem:[%s2660_s5 + $0xb8] sm:$0xff]  ;;  %v1795_v8 = vld [vmem:[%s2660_s5 + $0xa0] sm:$0xff] }
  0x76   : > { %v811_v44 = vmul.f32 %v1933_v43, %v809_v30  ;;  %vm816_vm13 = vweird.f32 %v1933_v43  ;;  %988 = vmatpush.bf16.msra.mxu1 %v1770_v10  ;;  %v1768_v30 = vld [vmem:[%s2660_s5 + $0x8] sm:$0xff]  ;;  %p1960_p13 = pnand %p1959_p12, %p1955_p7 }
  0x77   : > { %vm817_vm14 = vmor %vm815_vm12, %vm816_vm13 }
  0x78   : > { %v812_v48 = vsub.f32 1.0, %v811_v44  ;;  %1246 = vmatpush.bf16.msrb.mxu0 %v1798_v51 }
  0x79   : > { %v1935_v52 = vpop.eup %1934  ;;  %1085 = vmatpush.bf16.msra.mxu2 %v1781_v25  ;;  %v796_v25 = vpack.c.bf16 %v2390_v11, %v2390_v11  ;;  %v1793_v11 = vld [vmem:[%s2660_s5 + $0x90] sm:$0xff] }
  0x7a   : > { %v813_v45 = vmul.f32 %v1933_v43, %v812_v48  ;;  %v753_v50 = vmul.f32 %v1935_v52, %v706_v37  ;;  %vm758_vm6 = vweird.f32 %v1935_v52 }
  0x7b   : > { %vm759_vm1 = vmor %vm757_vm0, %vm758_vm6 }
  0x7c   : > { %v814_v60 = vadd.f32 %v1933_v43, %v813_v45  ;;  %v754_v22 = vsub.f32 1.0, %v753_v50  ;;  %v1802_v45 = vld [vmem:[%s2661_s6 + $0x58] sm:$0xff] }
  0x7d   : > { %1086 = vmatpush.bf16.msra.mxu2 %v1780_v26 }
  0x7e   : > { %v818_v63 = vsel %vm817_vm14, %v1933_v43, %v814_v60  ;;  %v755_v0 = vmul.f32 %v1935_v52, %v754_v22 }
  0x7f   : > { %v823_v53 = vsel %vm820_vm15, %v822_v57, %v818_v63  ;;  %v1801_v63 = vld [vmem:[%s2661_s6 + $0x50] sm:$0xff] }
  0x80   : > { %v2442_v1 = vmul.f32 %v823_v53, %v2356_v23  ;;  %v756_v54 = vadd.f32 %v1935_v52, %v755_v0  ;;  %v1789_v23 = vld [vmem:[%s2661_s6 + $0x30] sm:$0xff]  ;;  %v673_v0 = vpack.c.bf16 %v2332_v55, %v2332_v55  ;;  %v1796_v55 = vld [vmem:[%s2660_s5 + $0xa8] sm:$0xff] }
  0x81   : > { %1157 = vmatpush.bf16.msra.mxu3 %v1789_v23  ;;  %1087 = vmatpush.bf16.msra.mxu2 %v1779_v31  ;;  %v1797_v53 = vld [vmem:[%s2660_s5 + $0xb0] sm:$0xff] }
  0x82   : > { %v1882_v5 = vpack.i.bf16 %v2439_v62, %v2442_v1  ;;  %v760_v4 = vsel %vm759_vm1, %v1935_v52, %v756_v54  ;;  %v832_v35 = vpack.c.bf16 %v2442_v1, %v2442_v1  ;;  %v2522_v52 = vunpack.c.l.b16 %v795_v39  ;;  %1247 = vmatpush.bf16.msrb.mxu0 %v1797_v53  ;;  %v1791_v39 = vld [vmem:[%s2660_s5 + $0x80] sm:$0xff] }
  0x83   : > { %v765_v24 = vsel %vm762_vm2, %v764_v2, %v760_v4  ;;  %v674_v1 = vpack.c.bf16 %v2342_v58, %v2342_v58  ;;  %v1026_v4 = vunpack.c.l.b16 %v673_v0 }
  0x84   : > { %1883 = vrot.lane.b32.xlu0 %v1882_v5, %s2032_s23  ;;  %v2448_v36 = vmul.f32 %v765_v24, %v2399_v18  ;;  %v1769_v18 = vld [vmem:[%s2660_s5 + $0x10] sm:$0xff]  ;;  %v838_v49 = vsel %vm2502_vm4, 0, %v832_v35  ;;  %1088 = vmatmul.bf16.vlgmr.msra.gmra.mxu2 %v1028_v38  ;;  %v1800_v5 = vld [vmem:[%s2661_s6 + $0x48] sm:$0xff] }
  0x85   : > { %1158 = vmatpush.bf16.msra.mxu3 %v1788_v59  ;;  %989 = vmatpush.bf16.msra.mxu1 %v1769_v18  ;;  %v928_v56 = vunpack.c.l.b16 %v838_v49  ;;  %v1027_v58 = vunpack.c.l.b16 %v674_v1 }
  0x86   : > { %781 = vrot.lane.b32.xlu2 %v2448_v36, %s2032_s23  ;;  %1248 = vmatpush.bf16.msrb.mxu0 %v1796_v55 }
  0x87   : > { %v932_v22 = vpack.c.b16 %v2522_v52, %v928_v56  ;;  %v1029_v7 = vpack.c.b16 %v1027_v58, %v1026_v4 }
  0x89   : > { %1159 = vmatpush.bf16.msra.mxu3 %v1787_v13  ;;  %990 = vmatpush.bf16.msra.mxu1 %v1768_v30  ;;  %v930_v13 = vunpack.c.l.b16 %v796_v25  ;;  %v1792_v30 = vld [vmem:[%s2660_s5 + $0x88] sm:$0xff] }
  0x8a   : > { %1249 = vmatpush.bf16.msrb.mxu0 %v1795_v8 }
  0x8d   : > { %991 = vmatpush.bf16.msra.mxu1 %v1767_v46  ;;  %1316 = vmatpush.bf16.msrb.mxu3 %v1802_v45 }
  0x8e   : > { %1250 = vmatpush.bf16.msrb.mxu0 %v1794_v20 }
  0x90   : > { %992 = vmatmul.bf16.vlgmr.msra.gmra.mxu1 %v932_v22 }
  0x91   : > { %1317 = vmatpush.bf16.msrb.mxu3 %v1801_v63  ;;  %v1194_v63 = vpack.c.b16 %v930_v13, %v2522_v52 }
  0x92   : > { %1251 = vmatpush.bf16.msrb.mxu0 %v1793_v11 }
  0x94   : > { %1093 = vmatmul.bf16.gmra.mxu2 %v1029_v7 }
  0x95   : > { %1318 = vmatpush.bf16.msrb.mxu3 %v1800_v5 }
  0x96   : > { %1252 = vmatpush.bf16.msrb.mxu0 %v1792_v30 }
  0x99   : > { %1319 = vmatpush.bf16.msrb.mxu3 %v1799_v15 }
  0x9a   : > { %1253 = vmatpush.bf16.msrb.mxu0 %v1791_v39 }
  0xd6   : > { %v1889_v37 = vpop.permute.xlu1 %1888 }
  0xd7   : > { %v1891_v40 = vunpack.i.h.bf16 %v1889_v37  ;;  %v1890_v42 = vunpack.i.l.bf16 %v1889_v37 }
  0xd9   : > { %v1879_v19 = vpop.permute.xlu0 %1878  ;;  %v664_v60 = vrot.slane %v1891_v40, 7  ;;  %v663_v61 = vrot.slane %v1890_v42, 7 }
  0xda   : > { %v1881_v21 = vunpack.i.h.bf16 %v1879_v19  ;;  %v1880_v28 = vunpack.i.l.bf16 %v1879_v19  ;;  %v933_v19 = vpack.c.b16 %v931_v17, %v930_v13 }
  0xdb   : > { %v670_v2 = vsel %vm546_vm3, 0.0, %v664_v60  ;;  %v669_v54 = vsel %vm546_vm3, 0.0, %v663_v61 }
  0xdc   : > { %v662_v33 = vrot.slane %v1881_v21, 7  ;;  %v661_v6 = vrot.slane %v1880_v28, 7  ;;  %v678_v24 = vpack.c.bf16 %v670_v2, %v670_v2  ;;  %v677_v23 = vpack.c.bf16 %v669_v54, %v669_v54  ;;  %997 = vmatmul.bf16.gmra.mxu1 %v933_v19 }
  0xde   : > { %v668_v43 = vsel %vm546_vm3, 0.0, %v662_v33  ;;  %v667_v44 = vsel %vm546_vm3, 0.0, %v661_v6  ;;  %v1119_v9 = vunpack.c.l.b16 %v678_v24  ;;  %v1118_v59 = vunpack.c.l.b16 %v677_v23  ;;  %v1894_v10 = vpop.permute.xlu1 %1893 }
  0xdf   : > { %v676_v47 = vpack.c.bf16 %v668_v43, %v668_v43  ;;  %v675_v48 = vpack.c.bf16 %v667_v44, %v667_v44  ;;  %v1895_v18 = vunpack.i.l.bf16 %v1894_v10  ;;  %v1896_v35 = vunpack.i.h.bf16 %v1894_v10 }
  0xe0   : > { %v1121_v26 = vpack.c.b16 %v1119_v9, %v1118_v59  ;;  %v798_v43 = vpack.c.bf16 %v2448_v36, %v2448_v36 }
  0xe1   : > { %v1117_v57 = vunpack.c.l.b16 %v676_v47  ;;  %v1116_v50 = vunpack.c.l.b16 %v675_v48  ;;  %v788_v27 = vrot.slane %v1895_v18, 7  ;;  %v789_v46 = vrot.slane %v1896_v35, 7  ;;  %v782_v48 = vpop.permute.xlu2 %781 }
  0xe2   : > { %v1193_v45 = vunpack.c.l.b16 %v798_v43 }
  0xe3   : > { %v1120_v62 = vpack.c.b16 %v1117_v57, %v1116_v50  ;;  %v792_v29 = vsel %vm546_vm3, 0.0, %v788_v27  ;;  %v793_v56 = vsel %vm546_vm3, 0.0, %v789_v46  ;;  %v790_v57 = vrot.slane %v782_v48, 7 }
  0xe4   : > { %v800_v32 = vpack.c.bf16 %v792_v29, %v792_v29  ;;  %v1195_v34 = vpack.c.b16 %v1193_v45, %v931_v17  ;;  %v801_v50 = vpack.c.bf16 %v793_v56, %v793_v56 }
  0xe5   : > { %1682 = vmatmul.msk.bf16.vlgmr.msra.gmra.mxu3 %vm898_vm5, %v1120_v62  ;;  %v794_v36 = vsel %vm546_vm3, 0.0, %v790_v57 }
  0xe6   : > { %v870_v44 = vunpack.c.l.b16 %v800_v32  ;;  %v871_v60 = vunpack.c.l.b16 %v801_v50  ;;  %v802_v61 = vpack.c.bf16 %v794_v36, %v794_v36 }
  0xe8   : > { %v1279_v22 = vunpack.c.l.b16 %v802_v61  ;;  %v873_v51 = vpack.c.b16 %v871_v60, %v870_v44 }
  0xea   : > { %v1281_v62 = vpack.c.b16 %v1279_v22, %v871_v60 }
  0xf5   : > { %1683 = vmatmul.msk.bf16.gmra.mxu3 %vm898_vm5, %v1121_v26 }
  0xf6   : > { %v1884_v16 = vpop.permute.xlu0 %1883 }
  0xf7   : > { %v1886_v21 = vunpack.i.h.bf16 %v1884_v16  ;;  %v1885_v28 = vunpack.i.l.bf16 %v1884_v16 }
  0xf9   : > { %v787_v31 = vrot.slane %v1886_v21, 7  ;;  %v830_v3 = vrot.slane %v1885_v28, 7 }
  0xfb   : > { %v791_v33 = vsel %vm546_vm3, 0.0, %v787_v31  ;;  %v831_v6 = vsel %vm546_vm3, 0.0, %v830_v3 }
  0xfc   : > { %v799_v37 = vpack.c.bf16 %v791_v33, %v791_v33  ;;  %v833_v38 = vpack.c.bf16 %v831_v6, %v831_v6 }
  0xfe   : > { %v869_v40 = vunpack.c.l.b16 %v799_v37  ;;  %v839_v42 = vsel %vm2502_vm4, 0, %v833_v38 }
  0xff   : > { %v868_v41 = vunpack.c.l.b16 %v839_v42 }
 0x100   : > { %v1280_v49 = vpack.c.b16 %v870_v44, %v869_v40 }
 0x101   : > { %v872_v47 = vpack.c.b16 %v869_v40, %v868_v41 }
 0x103   : > { %1576 = vmatmul.msk.bf16.vlgmr.msra.gmra.mxu0 %vm898_vm5, %v872_v47 }
 0x105   : > { %1756 = vmatmul.msk.bf16.vlgmr.msrb.gmra.mxu3 %vm898_vm5, %v1280_v49 }
 0x107   : > { %v1089_v55 = vpop.f32.mrf.mxu2 }
 0x10d   : > { %v993_v14 = vpop.f32.mrf.mxu1 }
 0x10f   : > { %v1091_v8 = vpop.f32.mrf.mxu2 }
 0x113   : > { %1577 = vmatmul.msk.bf16.gmra.mxu0 %vm898_vm5, %v873_v51 }
 0x115   : > { %1757 = vmatmul.msk.bf16.gmra.mxu3 %vm898_vm5, %v1281_v62  ;;  %v995_v24 = vpop.f32.mrf.mxu1 }
 0x117   : > { %v1094_v26 = vpop.f32.mrf.mxu2 }
 0x11f   : > { %v1096_v3 = vpop.f32.mrf.mxu2 }
 0x123   : > { %1254 = vmatmul.bf16.vlgmr.msrb.gmra.mxu0 %v1194_v63 }
 0x133   : > { %1259 = vmatmul.bf16.gmra.mxu0 %v1195_v34 }
 0x159   : > { %v998_v13 = vpop.f32.mrf.mxu1 }
 0x161   : > { %v1000_v29 = vpop.f32.mrf.mxu1 }
 0x168   : > { %v1161_v53 = vpop.f32.mrf.mxu3 }
 0x170   : > { %v1163_v0 = vpop.f32.mrf.mxu3 }
 0x178   : > { %v1166_v54 = vpop.f32.mrf.mxu3 }
 0x180   : > { %v914_v1 = vpop.f32.mrf.mxu0  ;;  %v1168_v4 = vpop.f32.mrf.mxu3 }
 0x181   : > { %v994_v58 = vadd.f32 %v993_v14, %v914_v1 }
 0x183   : > { %v1099_v7 = vadd.f32 %v1089_v55, %v994_v58 }
 0x185   : > { %v1171_v52 = vadd.f32 %v1161_v53, %v1099_v7 }
 0x188   : > { %v916_v2 = vpop.f32.mrf.mxu0  ;;  %v1321_v9 = vpop.f32.mrf.mxu3 }
 0x189   : > { %v996_v59 = vadd.f32 %v995_v24, %v916_v2 }
 0x18b   : > { %v1100_v17 = vadd.f32 %v1091_v8, %v996_v59 }
 0x18d   : > { %v1172_v27 = vadd.f32 %v1163_v0, %v1100_v17 }
 0x190   : > { %v919_v5 = vpop.f32.mrf.mxu0  ;;  %v1323_v20 = vpop.f32.mrf.mxu3 }
 0x191   : > { %v999_v15 = vadd.f32 %v998_v13, %v919_v5 }
 0x193   : > { %v1101_v21 = vadd.f32 %v1094_v26, %v999_v15 }
 0x195   : > { %v1173_v32 = vadd.f32 %v1166_v54, %v1101_v21 }
 0x198   : > { %v921_v23 = vpop.f32.mrf.mxu0  ;;  %v1326_v33 = vpop.f32.mrf.mxu3 }
 0x199   : > { %v1001_v31 = vadd.f32 %v1000_v29, %v921_v23 }
 0x19b   : > { %v1102_v37 = vadd.f32 %v1096_v3, %v1001_v31 }
 0x19d   : > { %v1174_v40 = vadd.f32 %v1168_v4, %v1102_v37 }
 0x1a0   : > { %v1255_v10 = vpop.f32.mrf.mxu0  ;;  %v1328_v44 = vpop.f32.mrf.mxu3 }
 0x1a1   : > { %v1265_v25 = vadd.f32 %v1255_v10, %v1171_v52 }
 0x1a3   : > { %v1331_v18 = vadd.f32 %v1321_v9, %v1265_v25 }
 0x1a5   : > { %v1339_v19 = vadd.f32 %v1899_v12, %v1331_v18 }
 0x1a7   : > { %1344 = vst.msk [vmem:[%s2598_s14] sm:$0xff] %vm1343_vm7, %v1339_v19 }
 0x1a8   : > { %v1257_v11 = vpop.f32.mrf.mxu0 }
 0x1a9   : > { %v1266_v16 = vadd.f32 %v1257_v11, %v1172_v27 }
 0x1ab   : > { %v1332_v28 = vadd.f32 %v1323_v20, %v1266_v16 }
 0x1ad   : > { %v1340_v30 = vadd.f32 %v1899_v12, %v1332_v28 }
 0x1af   : > { %1345 = vst.msk [vmem:[%s2598_s14 + $0x8] sm:$0xff] %vm1343_vm7, %v1340_v30 }
 0x1b0   : > { %v1260_v6 = vpop.f32.mrf.mxu0 }
 0x1b1   : > { %v1267_v35 = vadd.f32 %v1260_v6, %v1173_v32 }
 0x1b3   : > { %v1333_v38 = vadd.f32 %v1326_v33, %v1267_v35 }
 0x1b5   : > { %v1341_v39 = vadd.f32 %v1899_v12, %v1333_v38 }
 0x1b7   : > { %1346 = vst.msk [vmem:[%s2598_s14 + $0x10] sm:$0xff] %vm1343_vm7, %v1341_v39 }
 0x1b8   : > { %v1262_v42 = vpop.f32.mrf.mxu0 }
 0x1b9   : > { %v1268_v43 = vadd.f32 %v1262_v42, %v1174_v40 }
 0x1bb   : > { %v1334_v41 = vadd.f32 %v1328_v44, %v1268_v43 }
 0x1bd   : > { %v1342_v46 = vadd.f32 %v1899_v12, %v1334_v41 }
 0x1bf   : > { %1347 = vst.msk [vmem:[%s2598_s14 + $0x18] sm:$0xff] %vm1343_vm7, %v1342_v46 }
 0x1c0   : > { %1963 = shalt.err (!%p1960_p13)
}
 0x1c1   : > { %s2033_s14 = smov 128   ;;  %s2034_s9 = smov 8  }
 0x1c2   : > { %1803 = dma.vmem_to_hbm [thread:$0]  (%p2140_p8), %s1364_s30, 512, %s1366_s16, %s1349_s21, %s2033_s14, %s2033_s14, %s2034_s9  }
 0x1c3 PF: > { %p1809_p0 = scmp.ge.s32.totalorder %s2030_s12, 2  ;;  %s1380_s26 = sand.u32 1, %s2002_s27  }
 0x1c4   : > { %s1381_s17 = scalar_lea.sflag [#allocation5], %s1380_s26 }
 0x1c5   : > { %p1806_p1 = pnand %p1809_p0, %p2144_p9 }
 0x1c7   : > { %p1807_p2 = pneg %p1806_p1 }
 0x1c9   : > { %1997 = dma.done.wait (%p1807_p2), %s1381_s17, 512  }
 0x1ca   : > { %1999 = vsyncadd (%p1807_p2), %s1381_s17, 4294966784  ;;  %s21_s12 = sadd.s32 1, %s2030_s12   ;;  %s2701_s19 = sld [smem:[#allocation7_spill]] }
 0x1cb   : > { %p18_p3 = scmp.ge.s32.totalorder %s21_s12, 6   ;;  %s2702_s16 = sld [smem:[#allocation8_spill]] }
 0x1cc   : > { %s2703_s27 = smov %s2006_s28  ;;  %s2704_s28 = smov %s2010_s29 }
 0x1cd   : > { %s2705_s29 = smov %s2152_s24  ;;  %s2706_s30 = smov %s2022_s10 }
 0x1ce   : > { %s2707_s9 = smov %s2026_s11  ;;  %20 = sbr.rel (!%p18_p3) target bundleno = 7 (0x7), region = 189 }
 0x1d0   : > { %s2708_s10 = smov %s2701_s19 }
 0x1d1   : > { %s2709_s11 = smov %s2702_s16 }
 0x1d3   :  { %1387 = vsyncpa [#allocation5], 1 }
 0x1d4   :  { %1389 = vsyncpa [#allocation5 + $0x1], 1 }

</bundles_post_ra>
